<compile_context>
chip_gen: v7x
topology: tpu7x:2x2x1
jax: 0.10.0
libtpu: 0.0.40
codegen_flags: <defaults>
</compile_context>

<pallas_src>
import functools
import math

import jax
import jax.numpy as jnp
from jax import lax
from jax.experimental import pallas as pl
from jax.experimental.pallas import tpu as pltpu


PARAM_ORDER = ["wq", "bq", "wk", "bk", "wv", "bv", "wo", "bo",
               "ln1g", "ln1b", "ln2g", "ln2b", "w1", "b1", "w2", "b2"]


def _layer_norm(x, g, b, eps=1e-5):
    # x: (T, H) f32, g/b: (1, H) f32
    mu = jnp.mean(x, axis=-1, keepdims=True)
    var = jnp.mean((x - mu) ** 2, axis=-1, keepdims=True)
    return (x - mu) * lax.rsqrt(var + eps) * g + b


def encoder_layer_kernel(x_ref, mask_ref,
                         wq_ref, bq_ref, wk_ref, bk_ref, wv_ref, bv_ref,
                         wo_ref, bo_ref,
                         ln1g_ref, ln1b_ref, ln2g_ref, ln2b_ref,
                         w1_ref, b1_ref, w2_ref, b2_ref,
                         out_ref,
                         q_sc, k_sc, v_sc, ctx_sc,
                         *, num_heads, q_tile):
    H = x_ref.shape[-1]
    dh = H // num_heads
    scale = 1.0 / math.sqrt(math.sqrt(dh))            # NeMo attn_scale, applied to q and k

    q_idx = pl.program_id(1)
    q_start = pl.multiple_of(q_idx * q_tile, q_tile)
    xq = x_ref[pl.ds(q_start, q_tile), :]             # (TQ, H) f32 query rows (residual path)
    xq_bf = xq.astype(jnp.bfloat16)
    addmask = mask_ref[...]                           # (1, L) additive key mask, f32

    # ---- K/V projections: once per batch element, cached across query tiles ----
    @pl.when(q_idx == 0)
    def _():
        x_all_bf = x_ref[...].astype(jnp.bfloat16)    # (L, H)
        kt = jnp.dot(x_all_bf, wk_ref[...],
                     preferred_element_type=jnp.float32) + bk_ref[...]
        k_sc[...] = (kt * scale).astype(jnp.bfloat16)
        vt = jnp.dot(x_all_bf, wv_ref[...],
                     preferred_element_type=jnp.float32) + bv_ref[...]
        v_sc[...] = vt.astype(jnp.bfloat16)

    # ---- Q projection for this query tile (full-width H x H matmul) ----
    qt = jnp.dot(xq_bf, wq_ref[...], preferred_element_type=jnp.float32) + bq_ref[...]
    q_sc[...] = (qt * scale).astype(jnp.bfloat16)

    # ---- per-head attention; static lane slices, contexts written into a (TQ, H) slab ----
    for h in range(num_heads):                        # num_heads is a small Python constant
        sl = slice(h * dh, (h + 1) * dh)
        qh = q_sc[:, sl]                              # (TQ, dh) bf16
        kh = k_sc[:, sl]                              # (L,  dh) bf16
        vh = v_sc[:, sl]                              # (L,  dh) bf16
        # QK^T without an explicit transpose: contract the dh (last) dims directly.
        scores = lax.dot_general(qh, kh, (((1,), (1,)), ((), ())),
                                 preferred_element_type=jnp.float32)        # (TQ, L)
        scores = scores + addmask
        scores = scores - jnp.max(scores, axis=-1, keepdims=True)
        p = jnp.exp(scores)
        denom = jnp.sum(p, axis=-1, keepdims=True)
        p = p * pl.reciprocal(denom, approx=True)                           # EUP, not VALU
        ctx_sc[:, sl] = jnp.dot(p.astype(jnp.bfloat16), vh,
                                preferred_element_type=jnp.float32)         # (TQ, dh)

    # ---- single full-width output projection (contraction depth H) + residual ----
    attn = jnp.dot(ctx_sc[...].astype(jnp.bfloat16), wo_ref[...],
                   preferred_element_type=jnp.float32) + bo_ref[...] + xq
    h1 = _layer_norm(attn, ln1g_ref[...], ln1b_ref[...])       # layer_norm_1 (f32)

    # ---- PositionWiseFF (relu) ----
    ff = jnp.dot(h1.astype(jnp.bfloat16), w1_ref[...],
                 preferred_element_type=jnp.float32) + b1_ref[...]
    ff = jnp.maximum(ff, 0.0)
    ff = jnp.dot(ff.astype(jnp.bfloat16), w2_ref[...],
                 preferred_element_type=jnp.float32) + b2_ref[...]
    out = ff + h1                                               # residual
    out_ref[...] = _layer_norm(out, ln2g_ref[...], ln2b_ref[...])   # layer_norm_2


def _prep_layer_params(p):
    """Cast torch-style f32 layer params into kernel layout (bf16 weights, f32 bias/LN)."""
    return dict(
        wq=p["wq"].astype(jnp.bfloat16), bq=p["bq"].astype(jnp.float32),
        wk=p["wk"].astype(jnp.bfloat16), bk=p["bk"].astype(jnp.float32),
        wv=p["wv"].astype(jnp.bfloat16), bv=p["bv"].astype(jnp.float32),
        wo=p["wo"].astype(jnp.bfloat16), bo=p["bo"].astype(jnp.float32),
        ln1g=p["ln1g"].astype(jnp.float32), ln1b=p["ln1b"].astype(jnp.float32),
        ln2g=p["ln2g"].astype(jnp.float32), ln2b=p["ln2b"].astype(jnp.float32),
        w1=p["w1"].astype(jnp.bfloat16), b1=p["b1"].astype(jnp.float32),
        w2=p["w2"].astype(jnp.bfloat16), b2=p["b2"].astype(jnp.float32),
    )


def encoder_layer(x, addmask, kp, num_heads, q_tile=256):
    B, L, H = x.shape
    assert H % num_heads == 0
    inner = kp["w1"].shape[1]
    TQ = q_tile if (L % q_tile == 0) else L     # query tile (falls back to full L)
    grid = (B, L // TQ)

    def const_spec(shape):
        n = len(shape)
        return pl.BlockSpec(shape, lambda b, q, _n=n: (0,) * _n)

    in_specs = [
        pl.BlockSpec((None, L, H), lambda b, q: (b, 0, 0)),    # full rows of this batch elem
        pl.BlockSpec((None, 1, L), lambda b, q: (b, 0, 0)),    # additive key mask
    ] + [const_spec(kp[name].shape) for name in PARAM_ORDER]

    # advisory cost estimate so XLA schedules the stacked per-layer custom calls sensibly
    flops = 8 * B * L * H * H + 4 * B * L * L * H + 4 * B * L * H * inner
    transcendentals = B * num_heads * L * L
    param_bytes = sum(int(v.size) * v.dtype.itemsize for v in kp.values())
    bytes_accessed = 2 * B * L * H * 4 + B * L * 4 + param_bytes

    return pl.pallas_call(
        functools.partial(encoder_layer_kernel, num_heads=num_heads, q_tile=TQ),
        out_shape=jax.ShapeDtypeStruct((B, L, H), jnp.float32),
        grid=grid,
        in_specs=in_specs,
        out_specs=pl.BlockSpec((None, TQ, H), lambda b, q: (b, q, 0)),
        scratch_shapes=[
            pltpu.VMEM((TQ, H), jnp.bfloat16),   # Q (scaled)
            pltpu.VMEM((L, H), jnp.bfloat16),    # K (scaled), cached across q tiles
            pltpu.VMEM((L, H), jnp.bfloat16),    # V, cached across q tiles
            pltpu.VMEM((TQ, H), jnp.float32),    # per-head context slab
        ],
        compiler_params=pltpu.CompilerParams(
            # b parallel (megacore); q must stay sequential so the K/V scratch cache
            # written at q==0 is valid for the rest of that batch element.
            dimension_semantics=("parallel", "arbitrary"),
            vmem_limit_bytes=48 * 1024 * 1024),
        cost_estimate=pl.CostEstimate(flops=flops,
                                      transcendentals=transcendentals,
                                      bytes_accessed=bytes_accessed),
    )(x, addmask, *[kp[n] for n in PARAM_ORDER])


def transformer_encoder(encoder_states, encoder_mask, params, num_heads):
    """Equivalent of TransformerEncoder.forward(encoder_states, encoder_mask) with
    encoder_mems_list=None, return_mems=False, pre_ln=False (no final LN),
    hidden_act='relu', all dropouts=0 (eval mode)."""
    # form_attention_mask: (1 - mask) * -10000, broadcast over heads/queries -> (B, 1, L)
    addmask = ((1.0 - encoder_mask.astype(jnp.float32)) * -10000.0)[:, None, :]
    kparams = [_prep_layer_params(p) for p in params]
    out = encoder_states.astype(jnp.float32)
    for kp in kparams:
        out = encoder_layer(out, addmask, kp, num_heads)
    return out


# ----------------------------- pure-JAX reference -----------------------------
def _ref_layer(x, addmask, p, num_heads):
    B, L, H = x.shape
    dh = H // num_heads
    scale = 1.0 / math.sqrt(math.sqrt(dh))

    def lin(z, w, b):
        return z @ w + b[0]

    def ln(z, g, b):
        mu = z.mean(-1, keepdims=True)
        var = ((z - mu) ** 2).mean(-1, keepdims=True)
        return (z - mu) / jnp.sqrt(var + 1e-5) * g[0] + b[0]

    q = lin(x, p["wq"], p["bq"]) * scale
    k = lin(x, p["wk"], p["bk"]) * scale
    v = lin(x, p["wv"], p["bv"])
    qh = q.reshape(B, L, num_heads, dh).transpose(0, 2, 1, 3)
    kh = k.reshape(B, L, num_heads, dh).transpose(0, 2, 1, 3)
    vh = v.reshape(B, L, num_heads, dh).transpose(0, 2, 1, 3)
    scores = jnp.einsum('bhqd,bhkd->bhqk', qh, kh) + addmask[:, :, None, :]
    probs = jax.nn.softmax(scores, axis=-1)
    ctx = jnp.einsum('bhqk,bhkd->bhqd', probs, vh).transpose(0, 2, 1, 3).reshape(B, L, H)
    attn = lin(ctx, p["wo"], p["bo"]) + x
    h1 = ln(attn, p["ln1g"], p["ln1b"])
    ff = jnp.maximum(lin(h1, p["w1"], p["b1"]), 0.0)
    ff = lin(ff, p["w2"], p["b2"])
    return ln(ff + h1, p["ln2g"], p["ln2b"])


def transformer_encoder_ref(x, enc_mask, params, num_heads):
    addmask = ((1.0 - enc_mask.astype(jnp.float32)) * -10000.0)[:, None, :]
    out = x
    for p in params:
        out = _ref_layer(out, addmask, p, num_heads)
    return out


# ----------------------------- parameter init -----------------------------
def init_params(key, num_layers, hidden, inner):
    params = []
    for _ in range(num_layers):
        key, *ks = jax.random.split(key, 17)

        def mat(k, shape, scale=0.05):
            return jax.random.normal(k, shape, jnp.float32) * scale

        params.append(dict(
            wq=mat(ks[0], (hidden, hidden)), bq=mat(ks[1], (1, hidden), 0.02),
            wk=mat(ks[2], (hidden, hidden)), bk=mat(ks[3], (1, hidden), 0.02),
            wv=mat(ks[4], (hidden, hidden)), bv=mat(ks[5], (1, hidden), 0.02),
            wo=mat(ks[6], (hidden, hidden)), bo=mat(ks[7], (1, hidden), 0.02),
            ln1g=1.0 + mat(ks[8], (1, hidden), 0.01), ln1b=mat(ks[9], (1, hidden), 0.01),
            ln2g=1.0 + mat(ks[10], (1, hidden), 0.01), ln2b=mat(ks[11], (1, hidden), 0.01),
            w1=mat(ks[12], (hidden, inner)), b1=mat(ks[13], (1, inner), 0.02),
            w2=mat(ks[14], (inner, hidden)), b2=mat(ks[15], (1, hidden), 0.02),
        ))
    return params


if __name__ == "__main__":
    B, L, H, INNER, NUM_HEADS, NUM_LAYERS = 2, 8, 32, 64, 4, 2

    key = jax.random.PRNGKey(0)
    kx, kp = jax.random.split(key)
    encoder_states = jax.random.normal(kx, (B, L, H), jnp.float32)
    # batch 0 fully valid, batch 1 has 2 padded (masked) positions at the end
    encoder_mask = jnp.ones((B, L), jnp.int32).at[1, L - 2:].set(0)

    params = init_params(kp, NUM_LAYERS, H, INNER)

    out = transformer_encoder(encoder_states, encoder_mask, params, NUM_HEADS)
    out = jax.block_until_ready(out)

    ref = transformer_encoder_ref(encoder_states, encoder_mask, params, NUM_HEADS)
    assert out.shape == (B, L, H)
    assert bool(jnp.all(jnp.isfinite(out)))
    # bf16 matmul operands (f32 accumulation) loosen the tolerance slightly vs pure-f32 ref
    assert bool(jnp.allclose(out, ref, atol=2e-2, rtol=2e-2)), float(jnp.max(jnp.abs(out - ref)))

    print("KERNEL_OK")
</pallas_src>

<mosaic_0001>
module attributes {stable_mosaic.version = 11 : i64} {
  func.func @encoder_layer_kernel(%arg0: i32, %arg1: i32, %arg2: memref<1x8x32xf32, #tpu.memory_space<vmem>>, %arg3: memref<1x1x8xf32, #tpu.memory_space<vmem>>, %arg4: memref<32x32xbf16, #tpu.memory_space<vmem>>, %arg5: memref<1x32xf32, #tpu.memory_space<vmem>>, %arg6: memref<32x32xbf16, #tpu.memory_space<vmem>>, %arg7: memref<1x32xf32, #tpu.memory_space<vmem>>, %arg8: memref<32x32xbf16, #tpu.memory_space<vmem>>, %arg9: memref<1x32xf32, #tpu.memory_space<vmem>>, %arg10: memref<32x32xbf16, #tpu.memory_space<vmem>>, %arg11: memref<1x32xf32, #tpu.memory_space<vmem>>, %arg12: memref<1x32xf32, #tpu.memory_space<vmem>>, %arg13: memref<1x32xf32, #tpu.memory_space<vmem>>, %arg14: memref<1x32xf32, #tpu.memory_space<vmem>>, %arg15: memref<1x32xf32, #tpu.memory_space<vmem>>, %arg16: memref<32x64xbf16, #tpu.memory_space<vmem>>, %arg17: memref<1x64xf32, #tpu.memory_space<vmem>>, %arg18: memref<64x32xbf16, #tpu.memory_space<vmem>>, %arg19: memref<1x32xf32, #tpu.memory_space<vmem>>, %arg20: memref<1x8x32xf32, #tpu.memory_space<vmem>>, %arg21: memref<8x32xbf16, #tpu.memory_space<vmem>>, %arg22: memref<8x32xbf16, #tpu.memory_space<vmem>>, %arg23: memref<8x32xbf16, #tpu.memory_space<vmem>>, %arg24: memref<8x32xf32, #tpu.memory_space<vmem>>) attributes {dimension_semantics = [#tpu.dimension_semantics<parallel>, #tpu.dimension_semantics<arbitrary>], iteration_bounds = array<i64: 2, 1>, scalar_prefetch = 0 : i64, scratch_operands = 4 : i64, tpu.core_type = #tpu.core_type<tc>, window_params = [{transform_indices = @transform_0, window_bounds = array<i64: 1, 8, 32>}, {transform_indices = @transform_1, window_bounds = array<i64: 1, 1, 8>}, {pipeline_mode = #tpu.pipeline_mode<synchronous>, transform_indices = @transform_2, window_bounds = array<i64: 32, 32>}, {pipeline_mode = #tpu.pipeline_mode<synchronous>, transform_indices = @transform_3, window_bounds = array<i64: 1, 32>}, {pipeline_mode = #tpu.pipeline_mode<synchronous>, transform_indices = @transform_4, window_bounds = array<i64: 32, 32>}, {pipeline_mode = #tpu.pipeline_mode<synchronous>, transform_indices = @transform_5, window_bounds = array<i64: 1, 32>}, {pipeline_mode = #tpu.pipeline_mode<synchronous>, transform_indices = @transform_6, window_bounds = array<i64: 32, 32>}, {pipeline_mode = #tpu.pipeline_mode<synchronous>, transform_indices = @transform_7, window_bounds = array<i64: 1, 32>}, {pipeline_mode = #tpu.pipeline_mode<synchronous>, transform_indices = @transform_8, window_bounds = array<i64: 32, 32>}, {pipeline_mode = #tpu.pipeline_mode<synchronous>, transform_indices = @transform_9, window_bounds = array<i64: 1, 32>}, {pipeline_mode = #tpu.pipeline_mode<synchronous>, transform_indices = @transform_10, window_bounds = array<i64: 1, 32>}, {pipeline_mode = #tpu.pipeline_mode<synchronous>, transform_indices = @transform_11, window_bounds = array<i64: 1, 32>}, {pipeline_mode = #tpu.pipeline_mode<synchronous>, transform_indices = @transform_12, window_bounds = array<i64: 1, 32>}, {pipeline_mode = #tpu.pipeline_mode<synchronous>, transform_indices = @transform_13, window_bounds = array<i64: 1, 32>}, {pipeline_mode = #tpu.pipeline_mode<synchronous>, transform_indices = @transform_14, window_bounds = array<i64: 32, 64>}, {pipeline_mode = #tpu.pipeline_mode<synchronous>, transform_indices = @transform_15, window_bounds = array<i64: 1, 64>}, {pipeline_mode = #tpu.pipeline_mode<synchronous>, transform_indices = @transform_16, window_bounds = array<i64: 64, 32>}, {pipeline_mode = #tpu.pipeline_mode<synchronous>, transform_indices = @transform_17, window_bounds = array<i64: 1, 32>}, {transform_indices = @transform_18, window_bounds = array<i64: 1, 8, 32>}]} {
    %c8_i32 = arith.constant 8 : i32
    %0 = arith.muli %arg1, %c8_i32 : i32
    %1 = tpu.assume_multiple %0, 8 : i32
    %c0 = arith.constant 0 : index
    %2 = arith.index_cast %1 : i32 to index
    %c0_0 = arith.constant 0 : index
    %3 = vector.load %arg2[%c0, %2, %c0_0] : memref<1x8x32xf32, #tpu.memory_space<vmem>>, vector<1x8x32xf32>
    %4 = vector.shape_cast %3 : vector<1x8x32xf32> to vector<8x32xf32>
    %5 = arith.truncf %4 : vector<8x32xf32> to vector<8x32xbf16>
    %c0_1 = arith.constant 0 : index
    %c0_2 = arith.constant 0 : index
    %c0_3 = arith.constant 0 : index
    %6 = vector.load %arg3[%c0_1, %c0_2, %c0_3] : memref<1x1x8xf32, #tpu.memory_space<vmem>>, vector<1x1x8xf32>
    %7 = vector.shape_cast %6 : vector<1x1x8xf32> to vector<1x8xf32>
    %c0_i32 = arith.constant 0 : i32
    %8 = arith.cmpi eq, %arg1, %c0_i32 : i32
    %9 = arith.extui %8 : i1 to i32
    %c0_i32_4 = arith.constant 0 : i32
    %10 = arith.cmpi ne, %9, %c0_i32_4 : i32
    scf.if %10 {
      %c0_96 = arith.constant 0 : index
      %c0_97 = arith.constant 0 : index
      %c0_98 = arith.constant 0 : index
      %170 = vector.load %arg2[%c0_96, %c0_97, %c0_98] : memref<1x8x32xf32, #tpu.memory_space<vmem>>, vector<1x8x32xf32>
      %171 = vector.shape_cast %170 : vector<1x8x32xf32> to vector<8x32xf32>
      %172 = arith.truncf %171 : vector<8x32xf32> to vector<8x32xbf16>
      %c0_99 = arith.constant 0 : index
      %c0_100 = arith.constant 0 : index
      %173 = vector.load %arg6[%c0_99, %c0_100] : memref<32x32xbf16, #tpu.memory_space<vmem>>, vector<32x32xbf16>
      %cst_101 = arith.constant dense<0.000000e+00> : vector<8x32xf32>
      %174 = tpu.matmul %172, %173, %cst_101 {dimension_numbers = #tpu.dot_dimension_numbers<[1], [0], [0], [1], [0, 0, 1, 1], [], []>} : vector<8x32xbf16>, vector<32x32xbf16>, vector<8x32xf32> -> vector<8x32xf32>
      %c0_102 = arith.constant 0 : index
      %c0_103 = arith.constant 0 : index
      %175 = vector.load %arg7[%c0_102, %c0_103] : memref<1x32xf32, #tpu.memory_space<vmem>>, vector<1x32xf32>
      %176 = vector.broadcast %175 : vector<1x32xf32> to vector<8x32xf32>
      %177 = arith.addf %174, %176 : vector<8x32xf32>
      %cst_104 = arith.constant 0.594603539 : f32
      %178 = vector.broadcast %cst_104 : f32 to vector<8x32xf32>
      %179 = arith.mulf %177, %178 : vector<8x32xf32>
      %180 = arith.truncf %179 : vector<8x32xf32> to vector<8x32xbf16>
      %c0_105 = arith.constant 0 : index
      %c0_106 = arith.constant 0 : index
      %181 = vector.load %arg22[%c0_105, %c0_106] : memref<8x32xbf16, #tpu.memory_space<vmem>>, vector<8x32xbf16>
      tpu.vector_store %arg22[%c0_105, %c0_106], %180 {strides = array<i32>} : memref<8x32xbf16, #tpu.memory_space<vmem>>, vector<8x32xbf16>,
      %c0_107 = arith.constant 0 : index
      %c0_108 = arith.constant 0 : index
      %182 = vector.load %arg8[%c0_107, %c0_108] : memref<32x32xbf16, #tpu.memory_space<vmem>>, vector<32x32xbf16>
      %cst_109 = arith.constant dense<0.000000e+00> : vector<8x32xf32>
      %183 = tpu.matmul %172, %182, %cst_109 {dimension_numbers = #tpu.dot_dimension_numbers<[1], [0], [0], [1], [0, 0, 1, 1], [], []>} : vector<8x32xbf16>, vector<32x32xbf16>, vector<8x32xf32> -> vector<8x32xf32>
      %c0_110 = arith.constant 0 : index
      %c0_111 = arith.constant 0 : index
      %184 = vector.load %arg9[%c0_110, %c0_111] : memref<1x32xf32, #tpu.memory_space<vmem>>, vector<1x32xf32>
      %185 = vector.broadcast %184 : vector<1x32xf32> to vector<8x32xf32>
      %186 = arith.addf %183, %185 : vector<8x32xf32>
      %187 = arith.truncf %186 : vector<8x32xf32> to vector<8x32xbf16>
      %c0_112 = arith.constant 0 : index
      %c0_113 = arith.constant 0 : index
      %188 = vector.load %arg23[%c0_112, %c0_113] : memref<8x32xbf16, #tpu.memory_space<vmem>>, vector<8x32xbf16>
      tpu.vector_store %arg23[%c0_112, %c0_113], %187 {strides = array<i32>} : memref<8x32xbf16, #tpu.memory_space<vmem>>, vector<8x32xbf16>,
    } else {
    }
    %c0_5 = arith.constant 0 : index
    %c0_6 = arith.constant 0 : index
    %11 = vector.load %arg4[%c0_5, %c0_6] : memref<32x32xbf16, #tpu.memory_space<vmem>>, vector<32x32xbf16>
    %cst = arith.constant dense<0.000000e+00> : vector<8x32xf32>
    %12 = tpu.matmul %5, %11, %cst {dimension_numbers = #tpu.dot_dimension_numbers<[1], [0], [0], [1], [0, 0, 1, 1], [], []>} : vector<8x32xbf16>, vector<32x32xbf16>, vector<8x32xf32> -> vector<8x32xf32>
    %c0_7 = arith.constant 0 : index
    %c0_8 = arith.constant 0 : index
    %13 = vector.load %arg5[%c0_7, %c0_8] : memref<1x32xf32, #tpu.memory_space<vmem>>, vector<1x32xf32>
    %14 = vector.broadcast %13 : vector<1x32xf32> to vector<8x32xf32>
    %15 = arith.addf %12, %14 : vector<8x32xf32>
    %cst_9 = arith.constant 0.594603539 : f32
    %16 = vector.broadcast %cst_9 : f32 to vector<8x32xf32>
    %17 = arith.mulf %15, %16 : vector<8x32xf32>
    %18 = arith.truncf %17 : vector<8x32xf32> to vector<8x32xbf16>
    %c0_10 = arith.constant 0 : index
    %c0_11 = arith.constant 0 : index
    %19 = vector.load %arg21[%c0_10, %c0_11] : memref<8x32xbf16, #tpu.memory_space<vmem>>, vector<8x32xbf16>
    tpu.vector_store %arg21[%c0_10, %c0_11], %18 {strides = array<i32>} : memref<8x32xbf16, #tpu.memory_space<vmem>>, vector<8x32xbf16>,
    %c0_12 = arith.constant 0 : index
    %c0_13 = arith.constant 0 : index
    %20 = vector.load %arg21[%c0_12, %c0_13] : memref<8x32xbf16, #tpu.memory_space<vmem>>, vector<8x8xbf16>
    %c0_14 = arith.constant 0 : index
    %c0_15 = arith.constant 0 : index
    %21 = vector.load %arg22[%c0_14, %c0_15] : memref<8x32xbf16, #tpu.memory_space<vmem>>, vector<8x8xbf16>
    %c0_16 = arith.constant 0 : index
    %c0_17 = arith.constant 0 : index
    %22 = vector.load %arg23[%c0_16, %c0_17] : memref<8x32xbf16, #tpu.memory_space<vmem>>, vector<8x8xbf16>
    %cst_18 = arith.constant dense<0.000000e+00> : vector<8x8xf32>
    %23 = tpu.matmul %20, %21, %cst_18 {dimension_numbers = #tpu.dot_dimension_numbers<[1], [1], [0], [0], [0, 0, 1, 0], [], []>} : vector<8x8xbf16>, vector<8x8xbf16>, vector<8x8xf32> -> vector<8x8xf32>
    %24 = vector.broadcast %7 : vector<1x8xf32> to vector<8x8xf32>
    %25 = arith.addf %23, %24 : vector<8x8xf32>
    %cst_19 = arith.constant dense<0xFF800000> : vector<8xf32>
    %26 = vector.multi_reduction <maximumf>, %25, %cst_19 [1] : vector<8x8xf32> to vector<8xf32>
    %27 = vector.shape_cast %26 : vector<8xf32> to vector<8x1xf32>
    %28 = vector.broadcast %27 : vector<8x1xf32> to vector<8x8xf32>
    %29 = arith.subf %25, %28 : vector<8x8xf32>
    %30 = math.exp %29 : vector<8x8xf32>
    %cst_20 = arith.constant dense<0.000000e+00> : vector<8xf32>
    %31 = vector.multi_reduction <add>, %30, %cst_20 [1] : vector<8x8xf32> to vector<8xf32>
    %32 = vector.shape_cast %31 : vector<8xf32> to vector<8x1xf32>
    %33 = tpu.reciprocal %32 {approx = true} : vector<8x1xf32> -> vector<8x1xf32>
    %34 = vector.broadcast %33 : vector<8x1xf32> to vector<8x8xf32>
    %35 = arith.mulf %30, %34 : vector<8x8xf32>
    %36 = arith.truncf %35 : vector<8x8xf32> to vector<8x8xbf16>
    %cst_21 = arith.constant dense<0.000000e+00> : vector<8x8xf32>
    %37 = tpu.matmul %36, %22, %cst_21 {dimension_numbers = #tpu.dot_dimension_numbers<[1], [0], [0], [1], [0, 0, 1, 1], [], []>} : vector<8x8xbf16>, vector<8x8xbf16>, vector<8x8xf32> -> vector<8x8xf32>
    %c0_22 = arith.constant 0 : index
    %c0_23 = arith.constant 0 : index
    %38 = vector.load %arg24[%c0_22, %c0_23] : memref<8x32xf32, #tpu.memory_space<vmem>>, vector<8x8xf32>
    tpu.vector_store %arg24[%c0_22, %c0_23], %37 {strides = array<i32>} : memref<8x32xf32, #tpu.memory_space<vmem>>, vector<8x8xf32>,
    %c0_24 = arith.constant 0 : index
    %c8 = arith.constant 8 : index
    %39 = vector.load %arg21[%c0_24, %c8] : memref<8x32xbf16, #tpu.memory_space<vmem>>, vector<8x8xbf16>
    %c0_25 = arith.constant 0 : index
    %c8_26 = arith.constant 8 : index
    %40 = vector.load %arg22[%c0_25, %c8_26] : memref<8x32xbf16, #tpu.memory_space<vmem>>, vector<8x8xbf16>
    %c0_27 = arith.constant 0 : index
    %c8_28 = arith.constant 8 : index
    %41 = vector.load %arg23[%c0_27, %c8_28] : memref<8x32xbf16, #tpu.memory_space<vmem>>, vector<8x8xbf16>
    %cst_29 = arith.constant dense<0.000000e+00> : vector<8x8xf32>
    %42 = tpu.matmul %39, %40, %cst_29 {dimension_numbers = #tpu.dot_dimension_numbers<[1], [1], [0], [0], [0, 0, 1, 0], [], []>} : vector<8x8xbf16>, vector<8x8xbf16>, vector<8x8xf32> -> vector<8x8xf32>
    %43 = vector.broadcast %7 : vector<1x8xf32> to vector<8x8xf32>
    %44 = arith.addf %42, %43 : vector<8x8xf32>
    %cst_30 = arith.constant dense<0xFF800000> : vector<8xf32>
    %45 = vector.multi_reduction <maximumf>, %44, %cst_30 [1] : vector<8x8xf32> to vector<8xf32>
    %46 = vector.shape_cast %45 : vector<8xf32> to vector<8x1xf32>
    %47 = vector.broadcast %46 : vector<8x1xf32> to vector<8x8xf32>
    %48 = arith.subf %44, %47 : vector<8x8xf32>
    %49 = math.exp %48 : vector<8x8xf32>
    %cst_31 = arith.constant dense<0.000000e+00> : vector<8xf32>
    %50 = vector.multi_reduction <add>, %49, %cst_31 [1] : vector<8x8xf32> to vector<8xf32>
    %51 = vector.shape_cast %50 : vector<8xf32> to vector<8x1xf32>
    %52 = tpu.reciprocal %51 {approx = true} : vector<8x1xf32> -> vector<8x1xf32>
    %53 = vector.broadcast %52 : vector<8x1xf32> to vector<8x8xf32>
    %54 = arith.mulf %49, %53 : vector<8x8xf32>
    %55 = arith.truncf %54 : vector<8x8xf32> to vector<8x8xbf16>
    %cst_32 = arith.constant dense<0.000000e+00> : vector<8x8xf32>
    %56 = tpu.matmul %55, %41, %cst_32 {dimension_numbers = #tpu.dot_dimension_numbers<[1], [0], [0], [1], [0, 0, 1, 1], [], []>} : vector<8x8xbf16>, vector<8x8xbf16>, vector<8x8xf32> -> vector<8x8xf32>
    %c0_33 = arith.constant 0 : index
    %c8_34 = arith.constant 8 : index
    %57 = vector.load %arg24[%c0_33, %c8_34] : memref<8x32xf32, #tpu.memory_space<vmem>>, vector<8x8xf32>
    tpu.vector_store %arg24[%c0_33, %c8_34], %56 {strides = array<i32>} : memref<8x32xf32, #tpu.memory_space<vmem>>, vector<8x8xf32>,
    %c0_35 = arith.constant 0 : index
    %c16 = arith.constant 16 : index
    %58 = vector.load %arg21[%c0_35, %c16] : memref<8x32xbf16, #tpu.memory_space<vmem>>, vector<8x8xbf16>
    %c0_36 = arith.constant 0 : index
    %c16_37 = arith.constant 16 : index
    %59 = vector.load %arg22[%c0_36, %c16_37] : memref<8x32xbf16, #tpu.memory_space<vmem>>, vector<8x8xbf16>
    %c0_38 = arith.constant 0 : index
    %c16_39 = arith.constant 16 : index
    %60 = vector.load %arg23[%c0_38, %c16_39] : memref<8x32xbf16, #tpu.memory_space<vmem>>, vector<8x8xbf16>
    %cst_40 = arith.constant dense<0.000000e+00> : vector<8x8xf32>
    %61 = tpu.matmul %58, %59, %cst_40 {dimension_numbers = #tpu.dot_dimension_numbers<[1], [1], [0], [0], [0, 0, 1, 0], [], []>} : vector<8x8xbf16>, vector<8x8xbf16>, vector<8x8xf32> -> vector<8x8xf32>
    %62 = vector.broadcast %7 : vector<1x8xf32> to vector<8x8xf32>
    %63 = arith.addf %61, %62 : vector<8x8xf32>
    %cst_41 = arith.constant dense<0xFF800000> : vector<8xf32>
    %64 = vector.multi_reduction <maximumf>, %63, %cst_41 [1] : vector<8x8xf32> to vector<8xf32>
    %65 = vector.shape_cast %64 : vector<8xf32> to vector<8x1xf32>
    %66 = vector.broadcast %65 : vector<8x1xf32> to vector<8x8xf32>
    %67 = arith.subf %63, %66 : vector<8x8xf32>
    %68 = math.exp %67 : vector<8x8xf32>
    %cst_42 = arith.constant dense<0.000000e+00> : vector<8xf32>
    %69 = vector.multi_reduction <add>, %68, %cst_42 [1] : vector<8x8xf32> to vector<8xf32>
    %70 = vector.shape_cast %69 : vector<8xf32> to vector<8x1xf32>
    %71 = tpu.reciprocal %70 {approx = true} : vector<8x1xf32> -> vector<8x1xf32>
    %72 = vector.broadcast %71 : vector<8x1xf32> to vector<8x8xf32>
    %73 = arith.mulf %68, %72 : vector<8x8xf32>
    %74 = arith.truncf %73 : vector<8x8xf32> to vector<8x8xbf16>
    %cst_43 = arith.constant dense<0.000000e+00> : vector<8x8xf32>
    %75 = tpu.matmul %74, %60, %cst_43 {dimension_numbers = #tpu.dot_dimension_numbers<[1], [0], [0], [1], [0, 0, 1, 1], [], []>} : vector<8x8xbf16>, vector<8x8xbf16>, vector<8x8xf32> -> vector<8x8xf32>
    %c0_44 = arith.constant 0 : index
    %c16_45 = arith.constant 16 : index
    %76 = vector.load %arg24[%c0_44, %c16_45] : memref<8x32xf32, #tpu.memory_space<vmem>>, vector<8x8xf32>
    tpu.vector_store %arg24[%c0_44, %c16_45], %75 {strides = array<i32>} : memref<8x32xf32, #tpu.memory_space<vmem>>, vector<8x8xf32>,
    %c0_46 = arith.constant 0 : index
    %c24 = arith.constant 24 : index
    %77 = vector.load %arg21[%c0_46, %c24] : memref<8x32xbf16, #tpu.memory_space<vmem>>, vector<8x8xbf16>
    %c0_47 = arith.constant 0 : index
    %c24_48 = arith.constant 24 : index
    %78 = vector.load %arg22[%c0_47, %c24_48] : memref<8x32xbf16, #tpu.memory_space<vmem>>, vector<8x8xbf16>
    %c0_49 = arith.constant 0 : index
    %c24_50 = arith.constant 24 : index
    %79 = vector.load %arg23[%c0_49, %c24_50] : memref<8x32xbf16, #tpu.memory_space<vmem>>, vector<8x8xbf16>
    %cst_51 = arith.constant dense<0.000000e+00> : vector<8x8xf32>
    %80 = tpu.matmul %77, %78, %cst_51 {dimension_numbers = #tpu.dot_dimension_numbers<[1], [1], [0], [0], [0, 0, 1, 0], [], []>} : vector<8x8xbf16>, vector<8x8xbf16>, vector<8x8xf32> -> vector<8x8xf32>
    %81 = vector.broadcast %7 : vector<1x8xf32> to vector<8x8xf32>
    %82 = arith.addf %80, %81 : vector<8x8xf32>
    %cst_52 = arith.constant dense<0xFF800000> : vector<8xf32>
    %83 = vector.multi_reduction <maximumf>, %82, %cst_52 [1] : vector<8x8xf32> to vector<8xf32>
    %84 = vector.shape_cast %83 : vector<8xf32> to vector<8x1xf32>
    %85 = vector.broadcast %84 : vector<8x1xf32> to vector<8x8xf32>
    %86 = arith.subf %82, %85 : vector<8x8xf32>
    %87 = math.exp %86 : vector<8x8xf32>
    %cst_53 = arith.constant dense<0.000000e+00> : vector<8xf32>
    %88 = vector.multi_reduction <add>, %87, %cst_53 [1] : vector<8x8xf32> to vector<8xf32>
    %89 = vector.shape_cast %88 : vector<8xf32> to vector<8x1xf32>
    %90 = tpu.reciprocal %89 {approx = true} : vector<8x1xf32> -> vector<8x1xf32>
    %91 = vector.broadcast %90 : vector<8x1xf32> to vector<8x8xf32>
    %92 = arith.mulf %87, %91 : vector<8x8xf32>
    %93 = arith.truncf %92 : vector<8x8xf32> to vector<8x8xbf16>
    %cst_54 = arith.constant dense<0.000000e+00> : vector<8x8xf32>
    %94 = tpu.matmul %93, %79, %cst_54 {dimension_numbers = #tpu.dot_dimension_numbers<[1], [0], [0], [1], [0, 0, 1, 1], [], []>} : vector<8x8xbf16>, vector<8x8xbf16>, vector<8x8xf32> -> vector<8x8xf32>
    %c0_55 = arith.constant 0 : index
    %c24_56 = arith.constant 24 : index
    %95 = vector.load %arg24[%c0_55, %c24_56] : memref<8x32xf32, #tpu.memory_space<vmem>>, vector<8x8xf32>
    tpu.vector_store %arg24[%c0_55, %c24_56], %94 {strides = array<i32>} : memref<8x32xf32, #tpu.memory_space<vmem>>, vector<8x8xf32>,
    %c0_57 = arith.constant 0 : index
    %c0_58 = arith.constant 0 : index
    %96 = vector.load %arg24[%c0_57, %c0_58] : memref<8x32xf32, #tpu.memory_space<vmem>>, vector<8x32xf32>
    %97 = arith.truncf %96 : vector<8x32xf32> to vector<8x32xbf16>
    %c0_59 = arith.constant 0 : index
    %c0_60 = arith.constant 0 : index
    %98 = vector.load %arg10[%c0_59, %c0_60] : memref<32x32xbf16, #tpu.memory_space<vmem>>, vector<32x32xbf16>
    %cst_61 = arith.constant dense<0.000000e+00> : vector<8x32xf32>
    %99 = tpu.matmul %97, %98, %cst_61 {dimension_numbers = #tpu.dot_dimension_numbers<[1], [0], [0], [1], [0, 0, 1, 1], [], []>} : vector<8x32xbf16>, vector<32x32xbf16>, vector<8x32xf32> -> vector<8x32xf32>
    %c0_62 = arith.constant 0 : index
    %c0_63 = arith.constant 0 : index
    %100 = vector.load %arg11[%c0_62, %c0_63] : memref<1x32xf32, #tpu.memory_space<vmem>>, vector<1x32xf32>
    %101 = vector.broadcast %100 : vector<1x32xf32> to vector<8x32xf32>
    %102 = arith.addf %99, %101 : vector<8x32xf32>
    %103 = arith.addf %102, %4 : vector<8x32xf32>
    %c0_64 = arith.constant 0 : index
    %c0_65 = arith.constant 0 : index
    %104 = vector.load %arg12[%c0_64, %c0_65] : memref<1x32xf32, #tpu.memory_space<vmem>>, vector<1x32xf32>
    %c0_66 = arith.constant 0 : index
    %c0_67 = arith.constant 0 : index
    %105 = vector.load %arg13[%c0_66, %c0_67] : memref<1x32xf32, #tpu.memory_space<vmem>>, vector<1x32xf32>
    %cst_68 = arith.constant dense<0.000000e+00> : vector<8xf32>
    %106 = vector.multi_reduction <add>, %103, %cst_68 [1] : vector<8x32xf32> to vector<8xf32>
    %107 = vector.shape_cast %106 : vector<8xf32> to vector<8x1xf32>
    %cst_69 = arith.constant 3.200000e+01 : f32
    %108 = vector.broadcast %cst_69 : f32 to vector<8x1xf32>
    %109 = arith.divf %107, %108 : vector<8x1xf32>
    %110 = vector.broadcast %109 : vector<8x1xf32> to vector<8x32xf32>
    %111 = arith.subf %103, %110 : vector<8x32xf32>
    %112 = arith.mulf %111, %111 : vector<8x32xf32>
    %cst_70 = arith.constant dense<0.000000e+00> : vector<8xf32>
    %113 = vector.multi_reduction <add>, %112, %cst_70 [1] : vector<8x32xf32> to vector<8xf32>
    %114 = vector.shape_cast %113 : vector<8xf32> to vector<8x1xf32>
    %cst_71 = arith.constant 3.200000e+01 : f32
    %115 = vector.broadcast %cst_71 : f32 to vector<8x1xf32>
    %116 = arith.divf %114, %115 : vector<8x1xf32>
    %117 = vector.broadcast %109 : vector<8x1xf32> to vector<8x32xf32>
    %118 = arith.subf %103, %117 : vector<8x32xf32>
    %cst_72 = arith.constant 9.99999974E-6 : f32
    %119 = vector.broadcast %cst_72 : f32 to vector<8x1xf32>
    %120 = arith.addf %116, %119 : vector<8x1xf32>
    %121 = math.rsqrt %120 : vector<8x1xf32>
    %122 = vector.broadcast %121 : vector<8x1xf32> to vector<8x32xf32>
    %123 = arith.mulf %118, %122 : vector<8x32xf32>
    %124 = vector.broadcast %104 : vector<1x32xf32> to vector<8x32xf32>
    %125 = arith.mulf %123, %124 : vector<8x32xf32>
    %126 = vector.broadcast %105 : vector<1x32xf32> to vector<8x32xf32>
    %127 = arith.addf %125, %126 : vector<8x32xf32>
    %128 = arith.truncf %127 : vector<8x32xf32> to vector<8x32xbf16>
    %c0_73 = arith.constant 0 : index
    %c0_74 = arith.constant 0 : index
    %129 = vector.load %arg16[%c0_73, %c0_74] : memref<32x64xbf16, #tpu.memory_space<vmem>>, vector<32x64xbf16>
    %cst_75 = arith.constant dense<0.000000e+00> : vector<8x64xf32>
    %130 = tpu.matmul %128, %129, %cst_75 {dimension_numbers = #tpu.dot_dimension_numbers<[1], [0], [0], [1], [0, 0, 1, 1], [], []>} : vector<8x32xbf16>, vector<32x64xbf16>, vector<8x64xf32> -> vector<8x64xf32>
    %c0_76 = arith.constant 0 : index
    %c0_77 = arith.constant 0 : index
    %131 = vector.load %arg17[%c0_76, %c0_77] : memref<1x64xf32, #tpu.memory_space<vmem>>, vector<1x64xf32>
    %132 = vector.broadcast %131 : vector<1x64xf32> to vector<8x64xf32>
    %133 = arith.addf %130, %132 : vector<8x64xf32>
    %cst_78 = arith.constant 0.000000e+00 : f32
    %134 = vector.broadcast %cst_78 : f32 to vector<8x64xf32>
    %135 = arith.maximumf %133, %134 : vector<8x64xf32>
    %136 = arith.truncf %135 : vector<8x64xf32> to vector<8x64xbf16>
    %c0_79 = arith.constant 0 : index
    %c0_80 = arith.constant 0 : index
    %137 = vector.load %arg18[%c0_79, %c0_80] : memref<64x32xbf16, #tpu.memory_space<vmem>>, vector<64x32xbf16>
    %cst_81 = arith.constant dense<0.000000e+00> : vector<8x32xf32>
    %138 = tpu.matmul %136, %137, %cst_81 {dimension_numbers = #tpu.dot_dimension_numbers<[1], [0], [0], [1], [0, 0, 1, 1], [], []>} : vector<8x64xbf16>, vector<64x32xbf16>, vector<8x32xf32> -> vector<8x32xf32>
    %c0_82 = arith.constant 0 : index
    %c0_83 = arith.constant 0 : index
    %139 = vector.load %arg19[%c0_82, %c0_83] : memref<1x32xf32, #tpu.memory_space<vmem>>, vector<1x32xf32>
    %140 = vector.broadcast %139 : vector<1x32xf32> to vector<8x32xf32>
    %141 = arith.addf %138, %140 : vector<8x32xf32>
    %142 = arith.addf %141, %127 : vector<8x32xf32>
    %c0_84 = arith.constant 0 : index
    %c0_85 = arith.constant 0 : index
    %143 = vector.load %arg14[%c0_84, %c0_85] : memref<1x32xf32, #tpu.memory_space<vmem>>, vector<1x32xf32>
    %c0_86 = arith.constant 0 : index
    %c0_87 = arith.constant 0 : index
    %144 = vector.load %arg15[%c0_86, %c0_87] : memref<1x32xf32, #tpu.memory_space<vmem>>, vector<1x32xf32>
    %cst_88 = arith.constant dense<0.000000e+00> : vector<8xf32>
    %145 = vector.multi_reduction <add>, %142, %cst_88 [1] : vector<8x32xf32> to vector<8xf32>
    %146 = vector.shape_cast %145 : vector<8xf32> to vector<8x1xf32>
    %cst_89 = arith.constant 3.200000e+01 : f32
    %147 = vector.broadcast %cst_89 : f32 to vector<8x1xf32>
    %148 = arith.divf %146, %147 : vector<8x1xf32>
    %149 = vector.broadcast %148 : vector<8x1xf32> to vector<8x32xf32>
    %150 = arith.subf %142, %149 : vector<8x32xf32>
    %151 = arith.mulf %150, %150 : vector<8x32xf32>
    %cst_90 = arith.constant dense<0.000000e+00> : vector<8xf32>
    %152 = vector.multi_reduction <add>, %151, %cst_90 [1] : vector<8x32xf32> to vector<8xf32>
    %153 = vector.shape_cast %152 : vector<8xf32> to vector<8x1xf32>
    %cst_91 = arith.constant 3.200000e+01 : f32
    %154 = vector.broadcast %cst_91 : f32 to vector<8x1xf32>
    %155 = arith.divf %153, %154 : vector<8x1xf32>
    %156 = vector.broadcast %148 : vector<8x1xf32> to vector<8x32xf32>
    %157 = arith.subf %142, %156 : vector<8x32xf32>
    %cst_92 = arith.constant 9.99999974E-6 : f32
    %158 = vector.broadcast %cst_92 : f32 to vector<8x1xf32>
    %159 = arith.addf %155, %158 : vector<8x1xf32>
    %160 = math.rsqrt %159 : vector<8x1xf32>
    %161 = vector.broadcast %160 : vector<8x1xf32> to vector<8x32xf32>
    %162 = arith.mulf %157, %161 : vector<8x32xf32>
    %163 = vector.broadcast %143 : vector<1x32xf32> to vector<8x32xf32>
    %164 = arith.mulf %162, %163 : vector<8x32xf32>
    %165 = vector.broadcast %144 : vector<1x32xf32> to vector<8x32xf32>
    %166 = arith.addf %164, %165 : vector<8x32xf32>
    %c0_93 = arith.constant 0 : index
    %c0_94 = arith.constant 0 : index
    %c0_95 = arith.constant 0 : index
    %167 = vector.load %arg20[%c0_93, %c0_94, %c0_95] : memref<1x8x32xf32, #tpu.memory_space<vmem>>, vector<1x8x32xf32>
    %168 = vector.shape_cast %167 : vector<1x8x32xf32> to vector<8x32xf32>
    %169 = vector.shape_cast %166 : vector<8x32xf32> to vector<1x8x32xf32>
    tpu.vector_store %arg20[%c0_93, %c0_94, %c0_95], %169 {strides = array<i32>} : memref<1x8x32xf32, #tpu.memory_space<vmem>>, vector<1x8x32xf32>,
    return
  }
  func.func @transform_0(%arg0: i32, %arg1: i32) -> (i32, i32, i32) {
    %c0_i32 = arith.constant 0 : i32
    %c0_i32_0 = arith.constant 0 : i32
    %c0_i32_1 = arith.constant 0 : i32
    return %arg0, %c0_i32, %c0_i32_0 : i32, i32, i32
  }
  func.func @transform_1(%arg0: i32, %arg1: i32) -> (i32, i32, i32) {
    %c0_i32 = arith.constant 0 : i32
    %c0_i32_0 = arith.constant 0 : i32
    %c0_i32_1 = arith.constant 0 : i32
    return %arg0, %c0_i32, %c0_i32_0 : i32, i32, i32
  }
  func.func @transform_2(%arg0: i32, %arg1: i32) -> (i32, i32) {
    %c0_i32 = arith.constant 0 : i32
    %c0_i32_0 = arith.constant 0 : i32
    %c0_i32_1 = arith.constant 0 : i32
    return %c0_i32, %c0_i32_0 : i32, i32
  }
  func.func @transform_3(%arg0: i32, %arg1: i32) -> (i32, i32) {
    %c0_i32 = arith.constant 0 : i32
    %c0_i32_0 = arith.constant 0 : i32
    %c0_i32_1 = arith.constant 0 : i32
    return %c0_i32, %c0_i32_0 : i32, i32
  }
  func.func @transform_4(%arg0: i32, %arg1: i32) -> (i32, i32) {
    %c0_i32 = arith.constant 0 : i32
    %c0_i32_0 = arith.constant 0 : i32
    %c0_i32_1 = arith.constant 0 : i32
    return %c0_i32, %c0_i32_0 : i32, i32
  }
  func.func @transform_5(%arg0: i32, %arg1: i32) -> (i32, i32) {
    %c0_i32 = arith.constant 0 : i32
    %c0_i32_0 = arith.constant 0 : i32
    %c0_i32_1 = arith.constant 0 : i32
    return %c0_i32, %c0_i32_0 : i32, i32
  }
  func.func @transform_6(%arg0: i32, %arg1: i32) -> (i32, i32) {
    %c0_i32 = arith.constant 0 : i32
    %c0_i32_0 = arith.constant 0 : i32
    %c0_i32_1 = arith.constant 0 : i32
    return %c0_i32, %c0_i32_0 : i32, i32
  }
  func.func @transform_7(%arg0: i32, %arg1: i32) -> (i32, i32) {
    %c0_i32 = arith.constant 0 : i32
    %c0_i32_0 = arith.constant 0 : i32
    %c0_i32_1 = arith.constant 0 : i32
    return %c0_i32, %c0_i32_0 : i32, i32
  }
  func.func @transform_8(%arg0: i32, %arg1: i32) -> (i32, i32) {
    %c0_i32 = arith.constant 0 : i32
    %c0_i32_0 = arith.constant 0 : i32
    %c0_i32_1 = arith.constant 0 : i32
    return %c0_i32, %c0_i32_0 : i32, i32
  }
  func.func @transform_9(%arg0: i32, %arg1: i32) -> (i32, i32) {
    %c0_i32 = arith.constant 0 : i32
    %c0_i32_0 = arith.constant 0 : i32
    %c0_i32_1 = arith.constant 0 : i32
    return %c0_i32, %c0_i32_0 : i32, i32
  }
  func.func @transform_10(%arg0: i32, %arg1: i32) -> (i32, i32) {
    %c0_i32 = arith.constant 0 : i32
    %c0_i32_0 = arith.constant 0 : i32
    %c0_i32_1 = arith.constant 0 : i32
    return %c0_i32, %c0_i32_0 : i32, i32
  }
  func.func @transform_11(%arg0: i32, %arg1: i32) -> (i32, i32) {
    %c0_i32 = arith.constant 0 : i32
    %c0_i32_0 = arith.constant 0 : i32
    %c0_i32_1 = arith.constant 0 : i32
    return %c0_i32, %c0_i32_0 : i32, i32
  }
  func.func @transform_12(%arg0: i32, %arg1: i32) -> (i32, i32) {
    %c0_i32 = arith.constant 0 : i32
    %c0_i32_0 = arith.constant 0 : i32
    %c0_i32_1 = arith.constant 0 : i32
    return %c0_i32, %c0_i32_0 : i32, i32
  }
  func.func @transform_13(%arg0: i32, %arg1: i32) -> (i32, i32) {
    %c0_i32 = arith.constant 0 : i32
    %c0_i32_0 = arith.constant 0 : i32
    %c0_i32_1 = arith.constant 0 : i32
    return %c0_i32, %c0_i32_0 : i32, i32
  }
  func.func @transform_14(%arg0: i32, %arg1: i32) -> (i32, i32) {
    %c0_i32 = arith.constant 0 : i32
    %c0_i32_0 = arith.constant 0 : i32
    %c0_i32_1 = arith.constant 0 : i32
    return %c0_i32, %c0_i32_0 : i32, i32
  }
  func.func @transform_15(%arg0: i32, %arg1: i32) -> (i32, i32) {
    %c0_i32 = arith.constant 0 : i32
    %c0_i32_0 = arith.constant 0 : i32
    %c0_i32_1 = arith.constant 0 : i32
    return %c0_i32, %c0_i32_0 : i32, i32
  }
  func.func @transform_16(%arg0: i32, %arg1: i32) -> (i32, i32) {
    %c0_i32 = arith.constant 0 : i32
    %c0_i32_0 = arith.constant 0 : i32
    %c0_i32_1 = arith.constant 0 : i32
    return %c0_i32, %c0_i32_0 : i32, i32
  }
  func.func @transform_17(%arg0: i32, %arg1: i32) -> (i32, i32) {
    %c0_i32 = arith.constant 0 : i32
    %c0_i32_0 = arith.constant 0 : i32
    %c0_i32_1 = arith.constant 0 : i32
    return %c0_i32, %c0_i32_0 : i32, i32
  }
  func.func @transform_18(%arg0: i32, %arg1: i32) -> (i32, i32, i32) {
    %c0_i32 = arith.constant 0 : i32
    %c0_i32_0 = arith.constant 0 : i32
    return %arg0, %arg1, %c0_i32 : i32, i32, i32
  }
}

</mosaic_0001>

<bundles_post_ra>
// kernel: tpu_custom_call.1
= control target key start
LH: loop header
LB: loop body
LE: loop exit
PB: predicated region body
PF: predicated region fallthrough
CT: control target
= control target key end

     0   :  { %s3011_s0 = inlined_call_operand.vmem [shape: f32[2,8,32], index: 0, kind: input, shape index: {}]   ;;  %s3012_s1 = inlined_call_operand.vmem [shape: f32[2,1,8], index: 1, kind: input, shape index: {}]   ;;  %s3013_s2 = inlined_call_operand.vmem [shape: bf16[32,32], index: 2, kind: input, shape index: {}]   ;;  %s3014_s3 = inlined_call_operand.hbm [shape: f32[1,32], index: 3, kind: input, shape index: {}]   ;;  %s3015_s4 = inlined_call_operand.vmem [shape: bf16[32,32], index: 4, kind: input, shape index: {}]   ;;  %s3016_s5 = inlined_call_operand.hbm [shape: f32[1,32], index: 5, kind: input, shape index: {}]   ;;  %s3017_s6 = inlined_call_operand.hbm [shape: bf16[32,32], index: 6, kind: input, shape index: {}]   ;;  %s3018_s7 = inlined_call_operand.hbm [shape: f32[1,32], index: 7, kind: input, shape index: {}]   ;;  %s3019_s8 = inlined_call_operand.hbm [shape: bf16[32,32], index: 8, kind: input, shape index: {}]   ;;  %s3020_s9 = inlined_call_operand.hbm [shape: f32[1,32], index: 9, kind: input, shape index: {}]   ;;  %s3021_s10 = inlined_call_operand.vmem [shape: f32[1,32], index: 10, kind: input, shape index: {}]   ;;  %s3022_s11 = inlined_call_operand.vmem [shape: f32[1,32], index: 11, kind: input, shape index: {}]   ;;  %s3023_s12 = inlined_call_operand.vmem [shape: f32[1,32], index: 12, kind: input, shape index: {}]   ;;  %s3024_s13 = inlined_call_operand.vmem [shape: f32[1,32], index: 13, kind: input, shape index: {}]   ;;  %s3025_s14 = inlined_call_operand.vmem [shape: bf16[32,64], index: 14, kind: input, shape index: {}]   ;;  %s3026_s15 = inlined_call_operand.vmem [shape: f32[1,64], index: 15, kind: input, shape index: {}]   ;;  %s3027_s16 = inlined_call_operand.vmem [shape: bf16[64,32], index: 16, kind: input, shape index: {}]   ;;  %s3028_s17 = inlined_call_operand.vmem [shape: f32[1,32], index: 17, kind: input, shape index: {}]   ;;  %s3029_s18 = inlined_call_operand.hbm [shape: f32[2,8,32], index: 18, kind: output, shape index: {}]  }
   0x1   :  { %3046 = sst [smem:[#allocation32_spill]] %s3011_s0 }
   0x2   :  { %3047 = sst [smem:[#allocation33_spill]] %s3012_s1 }
   0x3   :  { %3048 = sst [smem:[#allocation34_spill]] %s3013_s2 }
   0x4   :  { %3049 = sst [smem:[#allocation35_spill]] %s3014_s3 }
   0x5   :  { %3050 = sst [smem:[#allocation36_spill]] %s3016_s5 }
   0x6   :  { %3051 = sst [smem:[#allocation37_spill]] %s3018_s7 }
   0x7   :  { %3052 = sst [smem:[#allocation38_spill]] %s3023_s12 }
   0x8   :  { %3053 = sst [smem:[#allocation39_spill]] %s3024_s13 }
   0x9   :  { %3054 = sst [smem:[#allocation40_spill]] %s3029_s18 }
   0xa   :  { %23 = vsyncpa [#allocation7], 0 }
   0xb   :  { %24 = vsyncpa [#allocation10], 0 }
   0xc   :  { %25 = vsyncpa [#allocation13], 0 }
   0xd   :  { %26 = vsyncpa [#allocation16], 0 }
   0xe   :  { %27 = vsyncpa [#allocation8], 0 }
   0xf   :  { %29 = vsyncpa [#allocation8 + $0x1], 0  ;;  %s2586_s27 = smov 0   ;;  %s2588_s28 = smov 0  }
  0x10   :  { %s2590_s29 = smov 0   ;;  %s2592_s30 = smov 0  }
  0x11   :  { %s2594_s0 = smov 0   ;;  %s2596_s19 = smov 0  }
  0x12 LB: > { %3055 = sst [smem:[#allocation23_spill]] %s2452_s27  ;;  %s1834_s1 = sadd.s32 4294967295, %s2472_s19   ;;  %s2472_s19 = sphi %s2596_s19, %s35_s19   ;;  %s2468_s0 = sphi %s2594_s0, %s3092_s0   ;;  %s2464_s30 = sphi %s2592_s30, %s3091_s30   ;;  %s2460_s29 = sphi %s2590_s29, %s3090_s29   ;;  %s2456_s28 = sphi %s2588_s28, %s3089_s28   ;;  %s2452_s27 = sphi %s2586_s27, %s3088_s27  }
  0x13   : > { %3056 = sst [smem:[#allocation24_spill]] %s2456_s28  ;;  %s1835_s20 = sadd.s32 4294967294, %s2472_s19  }
  0x14   : > { %3057 = sst [smem:[#allocation25_spill]] %s2460_s29  ;;  %s47_s21 = sadd.s32 1, %s2468_s0 }
  0x15   : > { %3058 = sst [smem:[#allocation26_spill]] %s2468_s0  ;;  %s444_s22 = sadd.s32 1, %s2460_s29 }
  0x16   : > { %3059 = sst [smem:[#allocation27_spill]] %s2472_s19  ;;  %p49_p0 = scmp.ge.s32.totalorder %s47_s21, 2 }
  0x17   : > { %p454_p1 = scmp.ne.s32.totalorder %s2460_s29, %s2456_s28  ;;  %p455_p2 = scmp.eq.s32.totalorder %s1834_s1, 1 }
  0x18   : > { %p460_p3 = scmp.ne.s32.totalorder %s2456_s28, %s2452_s27  ;;  %s3094_s21 = smov (%p49_p0, %s47_s21), 0 }
  0x19   : > { %3060 = sst [smem:[#allocation28_spill]] %s3094_s21  ;;  %p2626_p4 = por %p455_p2, %p454_p1 }
  0x1a   : > { %p461_p5 = scmp.eq.s32.totalorder %s1835_s20, 1  ;;  %s439_s23 = ssub.s32 %s2468_s0, %s3094_s21 }
  0x1b   : > { %s3061_s2 = scalar_select %p2626_p4, 1, 0 }
  0x1c   : > { %p1836_p6 = scmp.ge.s32.totalorder %s2472_s19, 1  ;;  %p442_p7 = scmp.eq.s32.totalorder %s439_s23, 0 }
  0x1d   : > { %3062 = sst [smem:[#allocation29_spill]] %s3061_s2  ;;  %p2633_p8 = por %p461_p5, %p460_p3 }
  0x1e   : > { %p468_p9 = scmp.lt.s32.totalorder %s2472_s19, 3  ;;  %p2645_p11 = scmp.eq.s32.totalorder %s1834_s1, 0 }
  0x1f   : > { %s3063_s24 = scalar_select %p2633_p8, 1, 0 }
  0x20   : > { %s2639_s25 = scalar_select %p442_p7, %s2460_s29, %s444_s22  }
  0x21   : > { %3064 = sst [smem:[#allocation30_spill]] %s3063_s24  ;;  %p2641_p10 = pnand %p1836_p6, %p468_p9 }
  0x22   : > { %3065 = sst [smem:[#allocation31_spill]] %s2639_s25  ;;  %s2474_s20 = smov [#allocation9]  }
  0x23   : > { %s3066_s26 = scalar_select %p2641_p10, 1, 0 }
  0x24   : > { %s3067_s27 = scalar_select %p2645_p11, 1, 0 }
  0x25   : > { %p2067_p12 = pneg %p2641_p10  ;;  %s498_s23 = sshll.u32 %s2474_s20, 4  ;;  %s499_s23 = int_to_ptr.vmem [resolvable:$true] %s498_s23 }
  0x26   : > { %s2475_s21 = smov [#allocation12]   ;;  %s3069_s5 = sld [smem:[#allocation36_spill]] }
  0x27   : > { %s522_s0 = sshll.u32 %s2475_s21, 4  ;;  %p2653_p13 = pnand %p2645_p11, %p2067_p12  ;;  %s2657_s0 = int_to_ptr.vmem [resolvable:$true] %s522_s0 }
  0x29   : > { %p2667_p1 = pneg %p2653_p13 }
  0x2c   : > { %s2210_s29 = scalar_lea.hbm %s3069_s5, 16 }
  0x2d   : > { %p2211_p0 = scmp.ne.s32.totalorder %s3069_s5, %s2210_s29  ;;  %p2217_p5 = scmp.lt.u32.totalorder %s2210_s29, %s3069_s5 }
  0x2f   : > { %p2213_p2 = pnand %p2667_p1, %p2211_p0 }
  0x31   : > { %p2214_p3 = pneg %p2213_p2 }
  0x33   : > { %p2219_p6 = pnand %p2217_p5, %p2214_p3 }
  0x35   : > { %2222 = shalt.err (!%p2219_p6)
}
  0x36   : > { %s2223_s25 = scalar_lea.vmem %s499_s23, 16  ;;  %s2230_s19 = scalar_lea.vmem %s499_s23, 32 }
  0x37   : > { %p2224_p7 = scmp.ne.s32.totalorder %s499_s23, %s2223_s25  ;;  %p2231_p8 = scmp.lt.s32.totalorder %s499_s23, %s499_s23 }
  0x38   : > { %p2232_p4 = scmp.lt.s32.totalorder %s2230_s19, %s2223_s25 }
  0x39   : > { %p2226_p9 = pnand %p2224_p7, %p2667_p1 }
  0x3a   : > { %p2233_p11 = por %p2232_p4, %p2231_p8 }
  0x3b   : > { %p2227_p12 = pneg %p2226_p9 }
  0x3d   : > { %p2234_p10 = pnand %p2233_p11, %p2227_p12 }
  0x3f   : > { %2237 = shalt.err (!%p2234_p10)
}
  0x40   : > { %2073 = dma.hbm_to_vmem [thread:$0]  (!%p2653_p13), %s3069_s5, 16, %s499_s23, [#allocation10]  }
  0x41   : > { %s3071_s7 = sld [smem:[#allocation37_spill]] }
  0x47   : > { %s2238_s21 = scalar_lea.hbm %s3071_s7, 16 }
  0x48   : > { %p2239_p0 = scmp.ne.s32.totalorder %s3071_s7, %s2238_s21  ;;  %p2245_p8 = scmp.lt.u32.totalorder %s2238_s21, %s3071_s7 }
  0x4a   : > { %p2241_p2 = pnand %p2239_p0, %p2667_p1 }
  0x4c   : > { %p2242_p4 = pneg %p2241_p2 }
  0x4e   : > { %p2247_p10 = pnand %p2245_p8, %p2242_p4 }
  0x50   : > { %2250 = shalt.err (!%p2247_p10)
}
  0x51   : > { %s2251_s23 = scalar_lea.vmem %s2657_s0, 16  ;;  %s2258_s12 = scalar_lea.vmem %s2657_s0, 32 }
  0x52   : > { %p2252_p11 = scmp.ne.s32.totalorder %s2657_s0, %s2251_s23  ;;  %p2259_p6 = scmp.lt.s32.totalorder %s2657_s0, %s2657_s0 }
  0x53   : > { %p2260_p7 = scmp.lt.s32.totalorder %s2258_s12, %s2251_s23 }
  0x54   : > { %p2254_p3 = pnand %p2252_p11, %p2667_p1 }
  0x55   : > { %p2261_p9 = por %p2260_p7, %p2259_p6 }
  0x56   : > { %p2255_p5 = pneg %p2254_p3 }
  0x58   : > { %p2262_p12 = pnand %p2261_p9, %p2255_p5 }
  0x5a   : > { %2265 = shalt.err (!%p2262_p12)
}
  0x5b   : > { %2079 = dma.hbm_to_vmem [thread:$0]  (!%p2653_p13), %s3071_s7, 16, %s2657_s0, [#allocation13]  }
  0x5c   : > { %s2476_s1 = smov [#allocation6]   ;;  %s2477_s29 = smov [#allocation11]  }
  0x5d   : > { %s484_s18 = sshll.u32 %s2476_s1, 4  ;;  %s508_s21 = sshll.u32 %s2477_s29, 4  ;;  %s485_s18 = int_to_ptr.vmem [resolvable:$true] %s484_s18  ;;  %s509_s21 = int_to_ptr.vmem [resolvable:$true] %s508_s21 }
  0x5e   : > { %s3072_s3 = sld [smem:[#allocation35_spill]] }
  0x64   : > { %s2266_s23 = scalar_lea.hbm %s3072_s3, 16 }
  0x65   : > { %p2267_p0 = scmp.ne.s32.totalorder %s3072_s3, %s2266_s23  ;;  %p2273_p8 = scmp.lt.u32.totalorder %s2266_s23, %s3072_s3 }
  0x67   : > { %p2269_p2 = pnand %p2267_p0, %p2667_p1 }
  0x69   : > { %p2270_p4 = pneg %p2269_p2 }
  0x6b   : > { %p2275_p10 = pnand %p2273_p8, %p2270_p4 }
  0x6d   : > { %2278 = shalt.err (!%p2275_p10)
}
  0x6e   : > { %s2279_s0 = scalar_lea.vmem %s485_s18, 16  ;;  %s2286_s24 = scalar_lea.vmem %s485_s18, 32 }
  0x6f   : > { %p2280_p11 = scmp.ne.s32.totalorder %s485_s18, %s2279_s0  ;;  %p2287_p6 = scmp.lt.s32.totalorder %s485_s18, %s485_s18 }
  0x70   : > { %p2288_p7 = scmp.lt.s32.totalorder %s2286_s24, %s2279_s0 }
  0x71   : > { %p2282_p3 = pnand %p2280_p11, %p2667_p1 }
  0x72   : > { %p2289_p9 = por %p2288_p7, %p2287_p6 }
  0x73   : > { %p2283_p5 = pneg %p2282_p3 }
  0x75   : > { %p2290_p12 = pnand %p2289_p9, %p2283_p5 }
  0x77   : > { %2293 = shalt.err (!%p2290_p12)
}
  0x78   : > { %2070 = dma.hbm_to_vmem [thread:$0]  (!%p2653_p13), %s3072_s3, 16, %s485_s18, [#allocation7]  }
  0x79   : > { %s2294_s25 = scalar_lea.hbm %s3017_s6, 256 }
  0x7a   : > { %p2295_p0 = scmp.ne.s32.totalorder %s3017_s6, %s2294_s25  ;;  %p2301_p8 = scmp.lt.u32.totalorder %s2294_s25, %s3017_s6 }
  0x7c   : > { %p2297_p2 = pnand %p2295_p0, %p2667_p1 }
  0x7e   : > { %p2298_p4 = pneg %p2297_p2 }
  0x80   : > { %p2303_p10 = pnand %p2301_p8, %p2298_p4 }
  0x82   : > { %2306 = shalt.err (!%p2303_p10)
}
  0x83   : > { %s2307_s0 = scalar_lea.vmem %s509_s21, 256  ;;  %p2315_p6 = scmp.lt.s32.totalorder %s509_s21, %s509_s21 }
  0x84   : > { %p2308_p11 = scmp.ne.s32.totalorder %s509_s21, %s2307_s0  ;;  %p2316_p7 = scmp.lt.s32.totalorder %s2307_s0, %s2307_s0 }
  0x86   : > { %p2310_p3 = pnand %p2308_p11, %p2667_p1  ;;  %p2317_p9 = por %p2316_p7, %p2315_p6 }
  0x88   : > { %p2311_p5 = pneg %p2310_p3 }
  0x8a   : > { %p2318_p12 = pnand %p2317_p9, %p2311_p5 }
  0x8c   : > { %2321 = shalt.err (!%p2318_p12)
}
  0x8d   : > { %s2478_s18 = smov 64   ;;  %s2479_s24 = smov 4  }
  0x8e   : > { %2076 = dma.hbm_to_vmem [thread:$0]  (!%p2653_p13), %s3017_s6, 256, %s509_s21, [#allocation10], %s2478_s18, %s2478_s18, %s2479_s24  }
  0x8f   : > { %s2480_s2 = smov [#allocation14]   ;;  %s2481_s25 = smov [#allocation15]  }
  0x90   : > { %s532_s29 = sshll.u32 %s2480_s2, 4  ;;  %s546_s19 = sshll.u32 %s2481_s25, 4  ;;  %s533_s29 = int_to_ptr.vmem [resolvable:$true] %s532_s29  ;;  %s547_s19 = int_to_ptr.vmem [resolvable:$true] %s546_s19 }
  0x91   : > { %s2322_s13 = scalar_lea.hbm %s3019_s8, 256 }
  0x92   : > { %p2323_p0 = scmp.ne.s32.totalorder %s3019_s8, %s2322_s13  ;;  %p2329_p8 = scmp.lt.u32.totalorder %s2322_s13, %s3019_s8 }
  0x94   : > { %p2325_p2 = pnand %p2323_p0, %p2667_p1 }
  0x96   : > { %p2326_p4 = pneg %p2325_p2 }
  0x98   : > { %p2331_p10 = pnand %p2329_p8, %p2326_p4 }
  0x9a   : > { %2334 = shalt.err (!%p2331_p10)
}
  0x9b   : > { %s2335_s21 = scalar_lea.vmem %s533_s29, 256  ;;  %p2343_p6 = scmp.lt.s32.totalorder %s533_s29, %s533_s29 }
  0x9c   : > { %p2336_p11 = scmp.ne.s32.totalorder %s533_s29, %s2335_s21  ;;  %p2344_p7 = scmp.lt.s32.totalorder %s2335_s21, %s2335_s21 }
  0x9e   : > { %p2338_p3 = pnand %p2336_p11, %p2667_p1  ;;  %p2345_p9 = por %p2344_p7, %p2343_p6 }
  0xa0   : > { %p2339_p5 = pneg %p2338_p3 }
  0xa2   : > { %p2346_p12 = pnand %p2345_p9, %p2339_p5 }
  0xa4   : > { %2349 = shalt.err (!%p2346_p12)
}
  0xa5   : > { %2082 = dma.hbm_to_vmem [thread:$0]  (!%p2653_p13), %s3019_s8, 256, %s533_s29, [#allocation13], %s2478_s18, %s2478_s18, %s2479_s24  }
  0xa6   : > { %s2350_s1 = scalar_lea.hbm %s3020_s9, 16 }
  0xa7   : > { %p2351_p0 = scmp.ne.s32.totalorder %s3020_s9, %s2350_s1  ;;  %p2357_p8 = scmp.lt.u32.totalorder %s2350_s1, %s3020_s9 }
  0xa9   : > { %p2353_p2 = pnand %p2351_p0, %p2667_p1 }
  0xab   : > { %p2354_p4 = pneg %p2353_p2 }
  0xad   : > { %p2359_p10 = pnand %p2357_p8, %p2354_p4 }
  0xaf   : > { %2362 = shalt.err (!%p2359_p10)
}
  0xb0   : > { %s2363_s13 = scalar_lea.vmem %s547_s19, 16  ;;  %s2370_s18 = scalar_lea.vmem %s547_s19, 32 }
  0xb1   : > { %p2364_p11 = scmp.ne.s32.totalorder %s547_s19, %s2363_s13  ;;  %p2371_p6 = scmp.lt.s32.totalorder %s547_s19, %s547_s19 }
  0xb2   : > { %p2372_p7 = scmp.lt.s32.totalorder %s2370_s18, %s2363_s13 }
  0xb3   : > { %p2366_p3 = pnand %p2364_p11, %p2667_p1 }
  0xb4   : > { %p2373_p9 = por %p2372_p7, %p2371_p6 }
  0xb5   : > { %p2367_p5 = pneg %p2366_p3 }
  0xb7   : > { %p2374_p12 = pnand %p2373_p9, %p2367_p5 }
  0xb9   : > { %2377 = shalt.err (!%p2374_p12)
}
  0xba   : > { %2085 = dma.hbm_to_vmem [thread:$0]  (!%p2653_p13), %s3020_s9, 16, %s547_s19, [#allocation16]  }
  0xbb   : > { %p3073_p0 = scmp.ne.s32.totalorder %s3066_s26, 0 }
  0xbc   : > { %p3074_p2 = scmp.ne.s32.totalorder (!%p3073_p0), %s3067_s27, 0 }
  0xbd   : > { %596 = sbr.rel (%p3073_p0) target bundleno = 2740 (0xab4), region = 92 }
  0xc4   : > { %2431 = dma.done.wait (%p3074_p2), [#allocation7], 16  }
  0xc5   : > { %2433 = vsyncadd (%p3074_p2), [#allocation7], 4294967280 }
  0xc6   : > { %2435 = dma.done.wait (%p3074_p2), [#allocation10], 272  }
  0xc7   : > { %2437 = vsyncadd (%p3074_p2), [#allocation10], 4294967024 }
  0xc8   : > { %2439 = dma.done.wait (%p3074_p2), [#allocation13], 272  }
  0xc9   : > { %2441 = vsyncadd (%p3074_p2), [#allocation13], 4294967024 }
  0xca   : > { %2443 = dma.done.wait (%p3074_p2), [#allocation16], 16  }
  0xcb   : > { %2445 = vsyncadd (%p3074_p2), [#allocation16], 4294967280  ;;  %p672_p13 = scmp.lt.s32.totalorder %s2464_s30, 1  ;;  %v2482_v0 = vmov 0.0   ;;  %vm2483_vm0 = vmmov 0   ;;  %s3075_s19 = sld [smem:[#allocation32_spill]] }
  0xcc   : > { %1941 = vmatprep.subr.bf16.mxu0 %v2482_v0  ;;  %1945 = vmatprep.mubr.msk.bf16.mxu0 %vm2483_vm0, %v2482_v0  ;;  %v2167_v1 = vld [vmem:[%s3015_s4] sm:$0xff]   ;;  %v2168_v2 = vld [vmem:[%s3015_s4 + $0x8] sm:$0xff]   ;;  %vm714_vm1 = vcmask 261120   ;;  %s3076_s2 = sld [smem:[#allocation34_spill]]  ;;  %v2171_v7 = vld [vmem:[#allocation11] sm:$0xff]   ;;  %vm760_vm2 = vcmask 257024  }
  0xcd   : > { %s2802_s26 = scalar_select %p672_p13, %s2464_s30, 1  ;;  %1949 = vmatprep.subr.bf16.mxu1 %v2482_v0  ;;  %1953 = vmatprep.mubr.msk.bf16.mxu1 %vm2483_vm0, %v2482_v0  ;;  %v2172_v8 = vld [vmem:[#allocation11 + $0x8] sm:$0xff]   ;;  %v1853_v9 = vld [vmem:[#allocation9] ss:$0 sm:$0xff]  ;;  %v1861_v17 = vld [vmem:[#allocation6] ss:$0 sm:$0xff] }
  0xce   : > { %1942 = vmatpush3.bf16.msra.mxu0 %v2167_v1  ;;  %1950 = vmatpush3.bf16.msra.mxu1 %v2171_v7  ;;  %vm907_vm3 = vcmask 64512   ;;  %s2484_s12 = smov 112   ;;  %s2485_s13 = smov 120   ;;  %v1857_v34 = vld [vmem:[#allocation12] ss:$0 sm:$0xff]  ;;  %vm969_vm4 = vcmask 1043456  }
  0xcf   : > { %s1852_s27 = sshll.u32 %s2802_s26, 3  ;;  %1943 = vmatprep.subr.bf16.mxu0 %v2482_v0  ;;  %1951 = vmatprep.subr.bf16.mxu1 %v2482_v0  ;;  %s2486_s18 = smov 104   ;;  %vm1140_vm5 = vcmask 130112   ;;  %vm1268_vm6 = vcmask 195712   ;;  %vm1396_vm7 = vcmask 261312   ;;  %vm1605_vm8 = vcmask 523264  }
  0xd0   : > { %s2488_s20 = smov 16   ;;  %s3078_s21 = sld [smem:[#allocation24_spill]] }
  0xd1   : > { %s675_s0 = scalar_lea.vmem %s3075_s19, %s1852_s27  ;;  %s3077_s27 = sld [smem:[#allocation33_spill]] }
  0xd2   : > { %v2817_v3 = vld [vmem:[%s675_s0] sm:$0xff]  ;;  %1944 = vmatpush3.bf16.msra.mxu0 %v2168_v2  ;;  %v2170_v6 = vld [vmem:[%s3076_s2 + $0x8] sm:$0xff]   ;;  %1952 = vmatpush3.bf16.msra.mxu1 %v2172_v8  ;;  %s2489_s19 = smov 24   ;;  %s3079_s7 = sld [smem:[#allocation29_spill]] }
  0xd3   : > { %v2169_v4 = vld [vmem:[%s3076_s2] sm:$0xff]   ;;  %v683_v5 = vpack.c.bf16 %v2817_v3, %v2817_v3  ;;  %1957 = vmatprep.subr.bf16.mxu0 %v2482_v0  ;;  %1965 = vmatprep.subr.bf16.mxu1 %v2482_v0  ;;  %s3080_s25 = sld [smem:[#allocation38_spill]] }
  0xd5   : > { %1946 = vmatmul.mubr.msk.bf16.vlgmr.msra.gmra.mrb[0].mxu0 %vm714_vm1, %v683_v5  ;;  %1954 = vmatmul.mubr.msk.bf16.vlgmr.msra.gmra.mrb[0].mxu1 %vm714_vm1, %v683_v5 }
  0xd6   : > { %1958 = vmatpush3.bf16.msra.mxu0 %v2169_v4  ;;  %1961 = vmatprep.mubr.msk.bf16.mxu0 %vm2483_vm0, %v2482_v0  ;;  %s669_s3 = sand.u32 1, %s3078_s21  }
  0xd7   : > { %1959 = vmatprep.subr.bf16.mxu0 %v2482_v0  ;;  %1967 = vmatprep.mubr.msk.bf16.mxu1 %vm2483_vm0, %v2482_v0  ;;  %s678_s22 = scalar_lea.vmem %s3077_s27, %s2802_s26  ;;  %s2487_s26 = smov 8  }
  0xd8   : > { %v1865_v52 = vld [vmem:[%s678_s22] ss:$0 sm:$0xff]  ;;  %s1851_s5 = sshll.u32 %s669_s3, 3  ;;  %p3083_p4 = scmp.ne.s32.totalorder %s3079_s7, 0 }
  0xd9   : > { %s671_s24 = scalar_lea.vmem [#allocation17], %s1851_s5 }
  0xda   : > { %1960 = vmatpush3.bf16.msra.mxu0 %v2170_v6  ;;  %s1695_s29 = sshll.u32 %s671_s24, 4  ;;  %s2965_s29 = int_to_ptr.vmem [resolvable:$true] %s1695_s29 }
  0xdb   : > { %1971 = vmatprep.subr.bf16.mxu0 %v2482_v0  ;;  %s2378_s0 = scalar_lea.vmem %s2965_s29, 128 }
  0xdc   : > { %p2379_p1 = scmp.ne.s32.totalorder %s2965_s29, %s2378_s0 }
  0xdd   : > { %1962 = vmatmul.mubr.msk.bf16.vlgmr.msra.gmra.mrb[4].mxu0 %vm714_vm1, %v683_v5 }
  0xde   : > { %1973 = vmatprep.mubr.msk.bf16.mxu0 %vm2483_vm0, %v2482_v0  ;;  %p2380_p8 = pnand %p2379_p1, %p3083_p4 }
  0xe0   : > { %p2381_p10 = pneg %p2380_p8 }
 0x1a8   : > { %v752_v10 = vpop.f32.mrb[0].mxu0  ;;  %v819_v35 = vpop.f32.mrb[0].mxu1 }
 0x1a9   : > { %v753_v11 = vadd.f32 %v1853_v9, %v752_v10  ;;  %v1947_v12 = vpop.f32.mrb[1].mxu0  ;;  %v820_v36 = vadd.f32 %v1857_v34, %v819_v35  ;;  %v1955_v37 = vpop.f32.mrb[1].mxu1 }
 0x1aa   : > { %v755_v13 = vpop.f32.mrb[2].mxu0  ;;  %v822_v38 = vpop.f32.mrb[2].mxu1 }
 0x1ab   : > { %v758_v14 = vmul.f32 0.59460354, %v753_v11  ;;  %v1948_v15 = vpop.f32.mrb[3].mxu0  ;;  %v825_v39 = vpack.c.bf16 %v820_v36, %v820_v36  ;;  %v1956_v40 = vpop.f32.mrb[3].mxu1 }
 0x1ad   : > { %v759_v16 = vpack.c.bf16 %v758_v14, %v758_v14  ;;  %826 = vst.msk [vmem:[#allocation4] sm:$0xf] %vm760_vm2, %v825_v39 }
 0x1af   : > { %761 = vst.msk [vmem:[#allocation3] sm:$0xf] %vm760_vm2, %v759_v16 }
 0x1b0   : > { %v888_v18 = vpop.f32.mrb[4].mxu0 }
 0x1b1   : > { %v889_v19 = vadd.f32 %v1861_v17, %v888_v18  ;;  %v1963_v20 = vpop.f32.mrb[5].mxu0 }
 0x1b2   : > { %v891_v21 = vpop.f32.mrb[6].mxu0 }
 0x1b3   : > { %v894_v22 = vmul.f32 0.59460354, %v889_v19  ;;  %v1964_v23 = vpop.f32.mrb[7].mxu0 }
 0x1b4   : > { %v900_v41 = vld [vmem:[#allocation4] sm:$0xf] }
 0x1b5   : > { %v895_v24 = vpack.c.bf16 %v894_v22, %v894_v22  ;;  %v971_v42 = vsel %vm969_vm4, %v900_v41, 0  ;;  %v2179_v20 = vld [vmem:[#allocation4] ss:$0 sps:$4 sm:$0xff]  }
 0x1b6   : > { %v899_v25 = vld [vmem:[#allocation3] sm:$0xf]  ;;  %1972 = vmatpush3.bf16.msra.mxu0 %v971_v42  ;;  %v2180_v36 = vld [vmem:[#allocation4] ss:$0 sps:$4 sm:$0xff]  }
 0x1b7   : > { %v2173_v26 = vld [vmem:[#allocation3] ss:$0 sps:$4 sm:$0xff]   ;;  %897 = vst.msk [vmem:[#allocation2] sm:$0xf] %vm760_vm2, %v895_v24  ;;  %v912_v27 = vsel %vm907_vm3, %v899_v25, 0  ;;  %1983 = vmatprep.subr.bf16.mxu0 %v2482_v0 }
 0x1b8   : > { %v2174_v28 = vld [vmem:[#allocation3] ss:$0 sps:$4 sm:$0xff]   ;;  %1966 = vmatpush3.bf16.xpose.msra.mxu1 %v912_v27  ;;  %1153 = vrot.lane.b32.xlu1 %v2173_v26, %s2484_s12  ;;  %v2181_v40 = vld [vmem:[#allocation4] ss:$0 sps:$4 sm:$0xff]  }
 0x1b9   : > { %1025 = vrot.lane.b32.xlu0 %v2174_v28, %s2485_s13  ;;  %1977 = vmatprep.subr.bf16.mxu1 %v2482_v0  ;;  %v2178_v33 = vld [vmem:[#allocation3] ss:$0 sps:$4 sm:$0xff]  }
 0x1be   : > { %v898_v29 = vld [vmem:[#allocation2] sm:$0xf] }
 0x1bf   : > { %v2175_v30 = vld [vmem:[#allocation2] ss:$0 sps:$4 sm:$0xff]   ;;  %1968 = vmatmul.mubr.msk.bf16.vlgmr.msra.gmra.mrb[4].mxu1 %vm907_vm3, %v898_v29 }
 0x1c0   : > { %v2176_v31 = vld [vmem:[#allocation2] ss:$0 sps:$4 sm:$0xff]   ;;  %1148 = vrot.lane.b32.xlu1 %v2175_v30, %s2484_s12  ;;  %1979 = vmatprep.mubr.msk.bf16.mxu1 %vm2483_vm0, %v2482_v0 }
 0x1c1   : > { %1020 = vrot.lane.b32.xlu0 %v2176_v31, %s2485_s13  ;;  %v2177_v32 = vld [vmem:[#allocation2] ss:$0 sps:$4 sm:$0xff]  }
 0x1c4   : > { %1276 = vrot.lane.b32.xlu1 %v2177_v32, %s2486_s18 }
 0x1c5   : > { %1281 = vrot.lane.b32.xlu0 %v2178_v33, %s2486_s18 }
 0x22a   : > { %v1154_v45 = vpop.permute.xlu1 %1153 }
 0x22b   : > { %v1026_v43 = vpop.permute.xlu0 %1025  ;;  %v1159_v47 = vsel %vm907_vm3, %v1154_v45, 0 }
 0x22c   : > { %v1031_v44 = vsel %vm907_vm3, %v1026_v43, 0 }
 0x22d   : > { %1978 = vmatpush3.bf16.xpose.msra.mxu1 %v1031_v44 }
 0x22e   : > { %1989 = vmatprep.subr.bf16.mxu1 %v2482_v0 }
 0x232   : > { %v1149_v49 = vpop.permute.xlu1 %1148 }
 0x233   : > { %v1021_v46 = vpop.permute.xlu0 %1020 }
 0x234   : > { %1980 = vmatmul.mubr.msk.bf16.vlgmr.msra.gmra.mrb[8].mxu1 %vm907_vm3, %v1021_v46 }
 0x235   : > { %1990 = vmatpush3.bf16.xpose.msra.mxu1 %v1159_v47  ;;  %1991 = vmatprep.mubr.msk.bf16.mxu1 %vm2483_vm0, %v2482_v0 }
 0x236   : > { %2001 = vmatprep.subr.bf16.mxu1 %v2482_v0  ;;  %v1277_v51 = vpop.permute.xlu1 %1276 }
 0x237   : > { %v1282_v48 = vpop.permute.xlu0 %1281 }
 0x238   : > { %v1287_v50 = vsel %vm907_vm3, %v1282_v48, 0 }
 0x23c   : > { %1992 = vmatmul.mubr.msk.bf16.vlgmr.msra.gmra.mrb[12].mxu1 %vm907_vm3, %v1149_v49 }
 0x23d   : > { %2002 = vmatpush3.bf16.xpose.msra.mxu1 %v1287_v50  ;;  %2003 = vmatprep.mubr.msk.bf16.mxu1 %vm2483_vm0, %v2482_v0 }
 0x23e   : > { %2013 = vmatprep.subr.bf16.mxu1 %v2482_v0 }
 0x244   : > { %2004 = vmatmul.mubr.msk.bf16.vlgmr.msra.gmra.mrb[16].mxu1 %vm907_vm3, %v1277_v51 }
 0x245   : > { %2017 = vmatprep.mubr.msk.bf16.mxu1 %vm2483_vm0, %v2482_v0 }
 0x292   : > { %v948_v53 = vpop.f32.mrb[4].mxu1 }
 0x293   : > { %v949_v54 = vadd.f32 %v1865_v52, %v948_v53  ;;  %v1969_v55 = vpop.f32.mrb[5].mxu1 }
 0x294   : > { %v951_v56 = vpop.f32.mrb[6].mxu1 }
 0x295   : > { %v1970_v57 = vpop.f32.mrb[7].mxu1  ;;  %v954_v58 = vsel %vm907_vm3, %v949_v54, -inf }
 0x296   : > { %955 = vmax.xlane.f32.xlu0 %v954_v58 }
 0x307   : > { %v1067_v59 = vpop.f32.mrb[8].mxu1 }
 0x308   : > { %v1068_v60 = vadd.f32 %v1865_v52, %v1067_v59  ;;  %v1981_v61 = vpop.f32.mrb[9].mxu1 }
 0x309   : > { %v1070_v62 = vpop.f32.mrb[10].mxu1 }
 0x30a   : > { %v1982_v63 = vpop.f32.mrb[11].mxu1  ;;  %v1073_v1 = vsel %vm907_vm3, %v1068_v60, -inf }
 0x30b   : > { %1074 = vmax.xlane.f32.xlu1 %v1073_v1 }
 0x30f   : > { %v1195_v2 = vpop.f32.mrb[12].mxu1 }
 0x310   : > { %v1196_v4 = vadd.f32 %v1865_v52, %v1195_v2  ;;  %v1993_v5 = vpop.f32.mrb[13].mxu1 }
 0x311   : > { %v1198_v6 = vpop.f32.mrb[14].mxu1 }
 0x312   : > { %v1994_v7 = vpop.f32.mrb[15].mxu1  ;;  %v1201_v8 = vsel %vm907_vm3, %v1196_v4, -inf  ;;  %v2182_v6 = vld [vmem:[#allocation14] sm:$0xff]  }
 0x313   : > { %1202 = vmax.xlane.f32.xlu0 %v1201_v8  ;;  %2014 = vmatpush3.bf16.msra.mxu1 %v2182_v6  ;;  %v2183_v7 = vld [vmem:[#allocation14 + $0x8] sm:$0xff]  }
 0x314   : > { %2015 = vmatprep.subr.bf16.mxu1 %v2482_v0 }
 0x317   : > { %v1323_v9 = vpop.f32.mrb[16].mxu1  ;;  %2016 = vmatpush3.bf16.msra.mxu1 %v2183_v7 }
 0x318   : > { %v1324_v10 = vadd.f32 %v1865_v52, %v1323_v9  ;;  %v2005_v11 = vpop.f32.mrb[17].mxu1  ;;  %2029 = vmatprep.subr.bf16.mxu1 %v2482_v0 }
 0x319   : > { %v1326_v12 = vpop.f32.mrb[18].mxu1 }
 0x31a   : > { %v2006_v13 = vpop.f32.mrb[19].mxu1  ;;  %v1329_v14 = vsel %vm907_vm3, %v1324_v10, -inf }
 0x31b   : > { %1330 = vmax.xlane.f32.xlu0 %v1329_v14 }
 0x323   : > { %v956_v15 = vpop.xlane.xlu0 %955 }
 0x324   : > { %v957_v16 = vsub.f32 %v949_v54, %v956_v15 }
 0x326   : > { %v958_v17 = vmul.f32 1.442695, %v957_v16 }
 0x328   : > { %2190 = vpow2.f32 %v958_v17 }
 0x332   : > { %v2191_v18 = vpop.eup %2190 }
 0x333   : > { %v960_v19 = vsel %vm907_vm3, %v2191_v18, 0.0 }
 0x334   : > { %961 = vadd.xlane.f32.xlu1 %v960_v19 }
 0x345   : > { %1088 = vrot.lane.b32.xlu1 %v2179_v20, %s2485_s13  ;;  %s3081_s13 = sld [smem:[#allocation39_spill]] }
 0x398   : > { %v1075_v21 = vpop.xlane.xlu1 %1074 }
 0x399   : > { %v1076_v22 = vsub.f32 %v1068_v60, %v1075_v21  ;;  %v1883_v21 = vld [vmem:[#allocation15] ss:$0 sm:$0xff] }
 0x39b   : > { %v1077_v23 = vmul.f32 1.442695, %v1076_v22 }
 0x39d   : > { %2192 = vpow2.f32 %v1077_v23 }
 0x3a0   : > { %v1203_v24 = vpop.xlane.xlu0 %1202 }
 0x3a1   : > { %v1204_v25 = vsub.f32 %v1196_v4, %v1203_v24 }
 0x3a3   : > { %v1205_v26 = vmul.f32 1.442695, %v1204_v25 }
 0x3a5   : > { %2194 = vpow2.f32 %v1205_v26 }
 0x3a7   : > { %v2193_v27 = vpop.eup %2192 }
 0x3a8   : > { %v1331_v28 = vpop.xlane.xlu0 %1330  ;;  %v1079_v29 = vsel %vm907_vm3, %v2193_v27, 0.0 }
 0x3a9   : > { %v1332_v30 = vsub.f32 %v1324_v10, %v1331_v28  ;;  %1080 = vadd.xlane.f32.xlu0 %v1079_v29 }
 0x3ab   : > { %v1333_v31 = vmul.f32 1.442695, %v1332_v30 }
 0x3ad   : > { %2196 = vpow2.f32 %v1333_v31 }
 0x3af   : > { %v2195_v32 = vpop.eup %2194 }
 0x3b0   : > { %v1207_v33 = vsel %vm907_vm3, %v2195_v32, 0.0 }
 0x3b1   : > { %1208 = vadd.xlane.f32.xlu1 %v1207_v33 }
 0x3b7   : > { %v2197_v34 = vpop.eup %2196 }
 0x3b8   : > { %v1335_v35 = vsel %vm907_vm3, %v2197_v34, 0.0 }
 0x3b9   : > { %1336 = vadd.xlane.f32.xlu0 %v1335_v35  ;;  %v2185_v35 = vld [vmem:[%s3025_s14 + $0x8] sm:$0xff]  }
 0x3c1   : > { %v962_v37 = vpop.xlane.xlu1 %961 }
 0x3c2   : > { %2198 = vrcp.f32 %v962_v37  ;;  %1344 = vrot.lane.b32.xlu1 %v2180_v36, %s2486_s18  ;;  %v2187_v36 = vld [vmem:[%s3027_s16 + $0x8] sm:$0xff]   ;;  %s1902_s18 = sshll.u32 %s2464_s30, 7  ;;  %s2490_s30 = smov [#allocation17]  }
 0x3c3   : > { %s2382_s21 = sshll.u32 %s2490_s30, 4  ;;  %s2383_s21 = int_to_ptr.vmem [resolvable:$false] %s2382_s21 }
 0x3c4   : > { %s2384_s5 = scalar_lea.vmem %s2383_s21, 256  ;;  %p2385_p11 = scmp.lt.s32.totalorder %s2965_s29, %s2383_s21 }
 0x3c5   : > { %v1089_v41 = vpop.permute.xlu1 %1088  ;;  %p2386_p3 = scmp.lt.s32.totalorder %s2384_s5, %s2378_s0 }
 0x3c6   : > { %v1094_v43 = vsel %vm969_vm4, %v1089_v41, 0  ;;  %v1887_v41 = vld [vmem:[%s3021_s10] ss:$0 sm:$0xff] }
 0x3c7   : > { %p2387_p5 = por %p2386_p3, %p2385_p11 }
 0x3c9   : > { %p2388_p6 = pnand %p2387_p5, %p2381_p10 }
 0x3cc   : > { %v2199_v38 = vpop.eup %2198 }
 0x3cd   : > { %v964_v39 = vmul.f32 %v2199_v38, %v2191_v18 }
 0x3cf   : > { %1216 = vrot.lane.b32.xlu0 %v2181_v40, %s2484_s12  ;;  %v965_v42 = vpack.c.bf16 %v964_v39, %v964_v39 }
 0x3d1   : > { %1974 = vmatmul.mubr.msk.bf16.vlgmr.msra.gmra.mrb[8].mxu0 %vm907_vm3, %v965_v42 }
 0x3d2   : > { %1984 = vmatpush3.bf16.msra.mxu0 %v1094_v43  ;;  %1985 = vmatprep.mubr.msk.bf16.mxu0 %vm2483_vm0, %v2482_v0  ;;  %v1888_v43 = vld [vmem:[%s3022_s11] ss:$0 sm:$0xff] }
 0x3d3   : > { %1995 = vmatprep.subr.bf16.mxu0 %v2482_v0 }
 0x436   : > { %v1081_v44 = vpop.xlane.xlu0 %1080 }
 0x437   : > { %2200 = vrcp.f32 %v1081_v44 }
 0x43e   : > { %v1209_v45 = vpop.xlane.xlu1 %1208 }
 0x43f   : > { %2202 = vrcp.f32 %v1209_v45 }
 0x441   : > { %v2201_v46 = vpop.eup %2200 }
 0x442   : > { %v1083_v47 = vmul.f32 %v2201_v46, %v2193_v27  ;;  %v1345_v54 = vpop.permute.xlu1 %1344 }
 0x443   : > { %v1350_v56 = vsel %vm969_vm4, %v1345_v54, 0 }
 0x444   : > { %v1084_v48 = vpack.c.bf16 %v1083_v47, %v1083_v47  ;;  %v2188_v47 = vld [vmem:[%s3027_s16 + $0x10] sm:$0xff]  }
 0x446   : > { %1986 = vmatmul.mubr.msk.bf16.vlgmr.msra.gmra.mrb[12].mxu0 %vm907_vm3, %v1084_v48  ;;  %v1337_v49 = vpop.xlane.xlu0 %1336  ;;  %v2189_v48 = vld [vmem:[%s3027_s16 + $0x18] sm:$0xff]  }
 0x447   : > { %2204 = vrcp.f32 %v1337_v49  ;;  %1997 = vmatprep.mubr.msk.bf16.mxu0 %vm2483_vm0, %v2482_v0  ;;  %v1889_v49 = vld [vmem:[%s3026_s15] ss:$0 sm:$0xff] }
 0x449   : > { %v2203_v50 = vpop.eup %2202 }
 0x44a   : > { %v1211_v51 = vmul.f32 %v2203_v50, %v2195_v32  ;;  %v1217_v52 = vpop.permute.xlu0 %1216 }
 0x44b   : > { %v1222_v53 = vsel %vm969_vm4, %v1217_v52, 0 }
 0x44c   : > { %1996 = vmatpush3.bf16.msra.mxu0 %v1222_v53  ;;  %v1212_v55 = vpack.c.bf16 %v1211_v51, %v1211_v51 }
 0x44d   : > { %2007 = vmatprep.subr.bf16.mxu0 %v2482_v0 }
 0x44f   : > { %1998 = vmatmul.mubr.msk.bf16.vlgmr.msra.gmra.mrb[16].mxu0 %vm907_vm3, %v1212_v55 }
 0x450   : > { %2008 = vmatpush3.bf16.msra.mxu0 %v1350_v56  ;;  %2009 = vmatprep.mubr.msk.bf16.mxu0 %vm2483_vm0, %v2482_v0 }
 0x451   : > { %v2205_v57 = vpop.eup %2204  ;;  %2021 = vmatprep.subr.bf16.mxu0 %v2482_v0 }
 0x452   : > { %v1339_v58 = vmul.f32 %v2205_v57, %v2197_v34  ;;  %v2184_v34 = vld [vmem:[%s3025_s14] sm:$0xff]  }
 0x454   : > { %v1340_v59 = vpack.c.bf16 %v1339_v58, %v1339_v58 }
 0x457   : > { %2010 = vmatmul.mubr.msk.bf16.vlgmr.msra.gmra.mrb[20].mxu0 %vm907_vm3, %v1340_v59 }
 0x458   : > { %2025 = vmatprep.mubr.msk.bf16.mxu0 %vm2483_vm0, %v2482_v0  ;;  %2022 = vmatpush3.bf16.msra.mxu0 %v2184_v34 }
 0x459   : > { %2023 = vmatprep.subr.bf16.mxu0 %v2482_v0 }
 0x45c   : > { %2024 = vmatpush3.bf16.msra.mxu0 %v2185_v35 }
 0x4a4   : > { %v1007_v60 = vpop.f32.mrb[8].mxu0 }
 0x4a5   : > { %1013 = vst.msk [vmem:[#allocation5] sm:$0xff] %vm907_vm3, %v1007_v60  ;;  %v1975_v61 = vpop.f32.mrb[9].mxu0 }
 0x4a6   : > { %v1010_v62 = vpop.f32.mrb[10].mxu0 }
 0x4a7   : > { %v1976_v63 = vpop.f32.mrb[11].mxu0 }
 0x519   : > { %v1130_v1 = vpop.f32.mrb[12].mxu0 }
 0x51a   : > { %1137 = vrot.lane.b32.xlu1 %v1130_v1, %s2487_s26  ;;  %v1987_v2 = vpop.f32.mrb[13].mxu0  ;;  %s3082_s26 = sld [smem:[#allocation40_spill]] }
 0x51b   : > { %v1133_v4 = vpop.f32.mrb[14].mxu0 }
 0x51c   : > { %v1988_v5 = vpop.f32.mrb[15].mxu0 }
 0x522   : > { %v1258_v8 = vpop.f32.mrb[16].mxu0 }
 0x523   : > { %1265 = vrot.lane.b32.xlu0 %v1258_v8, %s2488_s20  ;;  %v1999_v9 = vpop.f32.mrb[17].mxu0  ;;  %s2963_s20 = scalar_lea.hbm %s3082_s26, %s1902_s18 }
 0x524   : > { %v1261_v10 = vpop.f32.mrb[18].mxu0 }
 0x525   : > { %v2000_v11 = vpop.f32.mrb[19].mxu0 }
 0x526   : > { %v1899_v11 = vld [vmem:[%s3080_s25] ss:$0 sm:$0xff] }
 0x52a   : > { %v1386_v12 = vpop.f32.mrb[20].mxu0 }
 0x52b   : > { %1393 = vrot.lane.b32.xlu1 %v1386_v12, %s2489_s19  ;;  %v2011_v13 = vpop.f32.mrb[21].mxu0  ;;  %s1681_s19 = scalar_lea.sflag [#allocation8], %s669_s3 }
 0x52c   : > { %v1389_v14 = vpop.f32.mrb[22].mxu0  ;;  %v1900_v13 = vld [vmem:[%s3081_s13] ss:$0 sm:$0xff] }
 0x52d   : > { %v2012_v15 = vpop.f32.mrb[23].mxu0 }
 0x58c   : > { %v1138_v16 = vpop.permute.xlu1 %1137 }
 0x58d   : > { %1141 = vst.msk [vmem:[#allocation5] sm:$0xff] %vm1140_vm5, %v1138_v16 }
 0x595   : > { %v1266_v17 = vpop.permute.xlu0 %1265 }
 0x596   : > { %1269 = vst.msk [vmem:[#allocation5] sm:$0xff] %vm1268_vm6, %v1266_v17 }
 0x59d   : > { %v1394_v18 = vpop.permute.xlu1 %1393 }
 0x59e   : > { %1397 = vst.msk [vmem:[#allocation5] sm:$0xff] %vm1396_vm7, %v1394_v18 }
 0x5a5   : > { %v1398_v19 = vld [vmem:[#allocation5] sm:$0xff] }
 0x5a6   : > { %v1399_v20 = vpack.c.bf16 %v1398_v19, %v1398_v19 }
 0x5a8   : > { %2018 = vmatmul.mubr.msk.bf16.vlgmr.msra.gmra.mrb[20].mxu1 %vm714_vm1, %v1399_v20 }
 0x5a9   : > { %2037 = vmatprep.mubr.msk.bf16.mxu1 %vm2483_vm0, %v2482_v0 }
 0x67b   : > { %v1460_v22 = vpop.f32.mrb[20].mxu1 }
 0x67c   : > { %v1461_v23 = vadd.f32 %v1883_v21, %v1460_v22  ;;  %v2019_v24 = vpop.f32.mrb[21].mxu1 }
 0x67d   : > { %v1463_v25 = vpop.f32.mrb[22].mxu1 }
 0x67e   : > { %v2020_v26 = vpop.f32.mrb[23].mxu1  ;;  %v1466_v27 = vadd.f32 %v1461_v23, %v2817_v3  ;;  %v2186_v3 = vld [vmem:[%s3027_s16] sm:$0xff]  }
 0x67f   : > { %2030 = vmatpush3.bf16.msra.mxu1 %v2186_v3 }
 0x680   : > { %v1469_v28 = vsel %vm714_vm1, %v1466_v27, 0.0  ;;  %2031 = vmatprep.subr.bf16.mxu1 %v2482_v0 }
 0x681   : > { %1470 = vadd.xlane.f32.xlu0 %v1469_v28 }
 0x683   : > { %2032 = vmatpush3.bf16.msra.mxu1 %v2187_v36 }
 0x684   : > { %2033 = vmatprep.subr.bf16.mxu1 %v2482_v0 }
 0x687   : > { %2034 = vmatpush3.bf16.msra.mxu1 %v2188_v47 }
 0x688   : > { %2035 = vmatprep.subr.bf16.mxu1 %v2482_v0  ;;  %v1893_v0 = vld [vmem:[%s3028_s17] ss:$0 sm:$0xff] }
 0x68b   : > { %2036 = vmatpush3.bf16.msra.mxu1 %v2189_v48 }
 0x70e   : > { %v1471_v29 = vpop.xlane.xlu0 %1470 }
 0x70f   : > { %v1473_v30 = vmul.f32 0.03125, %v1471_v29 }
 0x711   : > { %v1474_v31 = vsub.f32 %v1466_v27, %v1473_v30 }
 0x713   : > { %v1475_v32 = vmul.f32 %v1474_v31, %v1474_v31 }
 0x715   : > { %v1476_v33 = vsel %vm714_vm1, %v1475_v32, 0.0 }
 0x716   : > { %1477 = vadd.xlane.f32.xlu1 %v1476_v33 }
 0x7a3   : > { %v1478_v37 = vpop.xlane.xlu1 %1477 }
 0x7a4   : > { %v1479_v38 = vmul.f32 0.03125, %v1478_v37 }
 0x7a6   : > { %v1480_v39 = vadd.f32 1e-05, %v1479_v38 }
 0x7a8   : > { %2206 = vrsqrt.f32 %v1480_v39 }
 0x7b2   : > { %v2207_v40 = vpop.eup %2206 }
 0x7b3   : > { %v1482_v42 = vmul.f32 %v2207_v40, %v1474_v31 }
 0x7b5   : > { %v1489_v44 = vmul.f32 %v1887_v41, %v1482_v42 }
 0x7b7   : > { %v1496_v45 = vadd.f32 %v1888_v43, %v1489_v44 }
 0x7b9   : > { %v1497_v46 = vpack.c.bf16 %v1496_v45, %v1496_v45 }
 0x7bb   : > { %2026 = vmatmul.mubr.msk.bf16.vlgmr.msra.gmra.mrb[24].mxu0 %vm714_vm1, %v1497_v46 }
 0x88e   : > { %v1558_v50 = vpop.f32.mrb[24].mxu0 }
 0x88f   : > { %v1559_v51 = vadd.f32 %v1889_v49, %v1558_v50  ;;  %v2027_v52 = vpop.f32.mrb[25].mxu0 }
 0x890   : > { %v1561_v53 = vpop.f32.mrb[26].mxu0 }
 0x891   : > { %v1564_v54 = vmax.f32 %v1559_v51, 0.0  ;;  %v2028_v55 = vpop.f32.mrb[27].mxu0 }
 0x893   : > { %v1565_v56 = vpack.c.bf16 %v1564_v54, %v1564_v54 }
 0x895   : > { %2038 = vmatmul.mubr.msk.bf16.vlgmr.msra.gmra.mrb[24].mxu1 %vm1605_vm8, %v1565_v56 }
 0x968   : > { %v1643_v57 = vpop.f32.mrb[24].mxu1 }
 0x969   : > { %v1644_v58 = vadd.f32 %v1893_v0, %v1643_v57  ;;  %v2039_v59 = vpop.f32.mrb[25].mxu1 }
 0x96a   : > { %v1646_v60 = vpop.f32.mrb[26].mxu1 }
 0x96b   : > { %v2040_v61 = vpop.f32.mrb[27].mxu1  ;;  %v1649_v62 = vadd.f32 %v1644_v58, %v1496_v45 }
 0x96d   : > { %v1652_v63 = vsel %vm714_vm1, %v1649_v62, 0.0 }
 0x96e   : > { %1653 = vadd.xlane.f32.xlu0 %v1652_v63 }
 0x9fb   : > { %v1654_v1 = vpop.xlane.xlu0 %1653 }
 0x9fc   : > { %v1655_v2 = vmul.f32 0.03125, %v1654_v1 }
 0x9fe   : > { %v1656_v4 = vsub.f32 %v1649_v62, %v1655_v2 }
 0xa00   : > { %v1657_v5 = vmul.f32 %v1656_v4, %v1656_v4 }
 0xa02   : > { %v1658_v6 = vsel %vm714_vm1, %v1657_v5, 0.0 }
 0xa03   : > { %1659 = vadd.xlane.f32.xlu0 %v1658_v6 }
 0xa90   : > { %v1660_v7 = vpop.xlane.xlu0 %1659 }
 0xa91   : > { %v1661_v8 = vmul.f32 0.03125, %v1660_v7 }
 0xa93   : > { %v1662_v9 = vadd.f32 1e-05, %v1661_v8 }
 0xa95   : > { %2208 = vrsqrt.f32 %v1662_v9 }
 0xa9f   : > { %v2209_v10 = vpop.eup %2208 }
 0xaa0   : > { %v1664_v12 = vmul.f32 %v2209_v10, %v1656_v4 }
 0xaa2   : > { %v1671_v14 = vmul.f32 %v1899_v11, %v1664_v12 }
 0xaa4   : > { %v1678_v15 = vadd.f32 %v1900_v13, %v1671_v14 }
 0xaa6   : > { %1679 = vst.msk [vmem:[%s671_s24] sm:$0xff] %vm714_vm1, %v1678_v15 }
 0xaa7   : > { %2391 = shalt.err (!%p2388_p6)
}
 0xaa8   : > { %s2392_s3 = scalar_lea.hbm %s2963_s20, 128  ;;  %s2396_s25 = scalar_lea.hbm %s3082_s26, 256 }
 0xaa9   : > { %p2393_p7 = scmp.ne.s32.totalorder %s2963_s20, %s2392_s3  ;;  %p2397_p0 = scmp.lt.u32.totalorder %s2963_s20, %s3082_s26 }
 0xaaa   : > { %p2398_p2 = scmp.lt.u32.totalorder %s2396_s25, %s2392_s3  ;;  %p2400_p1 = scmp.lt.u32.totalorder %s2392_s3, %s2963_s20 }
 0xaab   : > { %p2394_p9 = pnand %p2393_p7, %p3083_p4 }
 0xaac   : > { %p2399_p13 = por %p2398_p2, %p2397_p0 }
 0xaad   : > { %p2395_p12 = pneg %p2394_p9 }
 0xaae   : > { %p2401_p8 = por %p2400_p1, %p2399_p13 }
 0xab0   : > { %p2402_p10 = pnand %p2401_p8, %p2395_p12 }
 0xab2   : > { %2405 = shalt.err (!%p2402_p10)
}
 0xab3   : > { %2065 = dma.vmem_to_hbm [thread:$0]  (%p3083_p4), %s2965_s29, 128, %s2963_s20, %s1681_s19  }
 0xab4 PF: > { %s3084_s13 = sld [smem:[#allocation27_spill]]  ;;  %s3085_s18 = sld [smem:[#allocation23_spill]] }
 0xab5   : > { %s3086_s24 = sld [smem:[#allocation30_spill]] }
 0xaba   : > { %p2102_p11 = scmp.ge.s32.totalorder %s3084_s13, 2  ;;  %s1707_s27 = sand.u32 1, %s3085_s18  }
 0xabb   : > { %p3087_p3 = scmp.ne.s32.totalorder %s3086_s24, 0  ;;  %s1708_s22 = scalar_lea.sflag [#allocation8], %s1707_s27 }
 0xabd   : > { %p2087_p5 = pnand %p2102_p11, %p3087_p3 }
 0xabf   : > { %2447 = dma.done.wait (!%p2087_p5), %s1708_s22, 128  }
 0xac0   : > { %2449 = vsyncadd (!%p2087_p5), %s1708_s22, 4294967168  ;;  %s35_s19 = sadd.s32 1, %s3084_s13   ;;  %s3088_s27 = sld [smem:[#allocation24_spill]] }
 0xac1   : > { %p32_p6 = scmp.ge.s32.totalorder %s35_s19, 4   ;;  %s3089_s28 = sld [smem:[#allocation25_spill]] }
 0xac2   : > { %s3090_s29 = sld [smem:[#allocation31_spill]]  ;;  %s3091_s30 = sld [smem:[#allocation26_spill]] }
 0xac3   : > { %s3092_s0 = sld [smem:[#allocation28_spill]]  ;;  %34 = sbr.rel (!%p32_p6) target bundleno = 18 (0x12), region = 160 }
 0xaca   :  { %1713 = vsyncpa [#allocation7], 1 }
 0xacb   :  { %1715 = vsyncpa [#allocation7 + $0x1], 1 }
 0xacc   :  { %1716 = vsyncpa [#allocation10], 1 }
 0xacd   :  { %1717 = vsyncpa [#allocation13], 1 }
 0xace   :  { %1718 = vsyncpa [#allocation16], 1 }
 0xacf   :  { %1719 = vsyncpa [#allocation8], 1 }
 0xad0   :  { %1721 = vsyncpa [#allocation8 + $0x1], 1 }

</bundles_post_ra>
